<compile_context>
chip_gen: v7x
topology: tpu7x:2x2x1
jax: 0.10.0
libtpu: 0.0.40
codegen_flags: <defaults>
</compile_context>

<pallas_src>
import functools
import math

import jax
import jax.numpy as jnp
from jax import lax
from jax.experimental import pallas as pl
from jax.experimental.pallas import tpu as pltpu

LN_EPS = float(jnp.finfo(jnp.float32).eps)   # spec's LayerNorm uses torch.finfo(dtype).eps
COMPUTE_DTYPE = jnp.bfloat16                 # MXU compute dtype / intermediate activations
TM_PREF, TN_PREF, TK_PREF = 512, 1024, 512   # matmul tile preferences (fit 32 MiB VMEM)


def _choose_tile(dim: int, preferred: int, align: int) -> int:
    """Largest tile <= preferred that divides `dim` (multiples of `align`); falls back
    to the full dim (used only for weight dims F / K, which are small or divisible)."""
    if dim <= preferred:
        return dim
    t = (preferred // align) * align
    while t >= align:
        if dim % t == 0:
            return t
        t -= align
    return dim


def _row_tile(m: int, preferred: int = TM_PREF) -> int:
    """Row (M) tile for a cdiv grid: full dim when small, else the preferred tile
    (multiple of 16 so bf16 stores stay sublane-packed); ragged tail is masked."""
    return m if m <= preferred else preferred


# ------------------------------------------------------------ exact GELU -----
_INV_SQRT2 = 0.7071067811865476


def _erf_approx(x):
    # Abramowitz & Stegun 7.1.26 (|err| <= 1.5e-7): keeps exact-GELU semantics
    # in-kernel without depending on a Mosaic erf primitive.
    p = 0.3275911
    a1, a2, a3, a4, a5 = (0.254829592, -0.284496736, 1.421413741,
                          -1.453152027, 1.061405429)
    ax = jnp.abs(x)
    t = 1.0 / (1.0 + p * ax)
    poly = ((((a5 * t + a4) * t + a3) * t + a2) * t + a1) * t
    y = 1.0 - poly * jnp.exp(-ax * ax)
    return jnp.where(x >= 0, y, -y)


def _gelu_exact(x):
    # TODO(synk): approximates nn.GELU()'s erf to ~1.5e-7 abs error (A&S polynomial).
    return 0.5 * x * (1.0 + _erf_approx(x * _INV_SQRT2))


# ---------------------------- fused (LayerNorm +) linear (+GELU / +residual) --
def _make_linear_kernel(do_ln: bool, do_gelu: bool, do_res: bool, eps: float):
    def kernel(*refs):
        idx = 0
        x_ref = refs[idx]; idx += 1
        if do_ln:
            g_ref, bln_ref = refs[idx], refs[idx + 1]; idx += 2
        w_ref, b_ref = refs[idx], refs[idx + 1]; idx += 2
        if do_res:
            res_ref = refs[idx]; idx += 1
        o_ref, acc_ref = refs[idx], refs[idx + 1]

        k = pl.program_id(2)

        @pl.when(k == 0)
        def _init():
            acc_ref[...] = jnp.zeros_like(acc_ref)

        if do_ln:
            # LN fused into the matmul prologue (tk == K so the whole row is here).
            xv = x_ref[...].astype(jnp.float32)
            mean = jnp.mean(xv, axis=-1, keepdims=True)
            xc = xv - mean
            var = jnp.mean(xc * xc, axis=-1, keepdims=True)
            xn = xc * lax.rsqrt(var + eps) * g_ref[...] + bln_ref[...]
            x_mx = xn.astype(COMPUTE_DTYPE)
        else:
            x_mx = x_ref[...].astype(COMPUTE_DTYPE)

        acc_ref[...] += jnp.dot(x_mx, w_ref[...],
                                preferred_element_type=jnp.float32)

        @pl.when(k == pl.num_programs(2) - 1)
        def _finalize():
            y = acc_ref[...] + b_ref[...].astype(jnp.float32)   # fp32 epilogue math
            if do_gelu:
                y = _gelu_exact(y)
            if do_res:
                y = y + res_ref[...].astype(jnp.float32)
            o_ref[...] = y.astype(o_ref.dtype)

    return kernel


def fused_linear(x2d, w, b, *, ln=None, gelu=False, residual=None, out_dtype=None):
    """y = [residual +] [gelu]( layernorm?(x) @ w + b )

    K-tiled bf16 MXU matmul with fp32 accumulation.  When `ln=(gamma, beta)` is given
    the LayerNorm is computed in fp32 on the (tm, K) x-tile inside the kernel (tk==K),
    removing the separate LN kernel and its HBM round trip.
    """
    M, K = x2d.shape
    K2, F = w.shape
    assert K == K2
    do_ln = ln is not None
    out_dtype = out_dtype if out_dtype is not None else x2d.dtype

    tm = _row_tile(M)                                        # cdiv grid, ragged tail ok
    tn = _choose_tile(F, TN_PREF, 128)
    tk = K if do_ln else _choose_tile(K, TK_PREF, 128)       # LN needs the full row
    grid = (pl.cdiv(M, tm), F // tn, K // tk)

    in_specs = [pl.BlockSpec((tm, tk), lambda i, j, k: (i, k))]
    inputs = [x2d]
    if do_ln:
        g, bln = ln
        in_specs += [pl.BlockSpec((1, K), lambda i, j, k: (0, 0)),
                     pl.BlockSpec((1, K), lambda i, j, k: (0, 0))]
        inputs += [g.reshape(1, K).astype(jnp.float32),
                   bln.reshape(1, K).astype(jnp.float32)]
    in_specs += [pl.BlockSpec((tk, tn), lambda i, j, k: (k, j)),
                 pl.BlockSpec((1, tn), lambda i, j, k: (0, j))]
    inputs += [w.astype(COMPUTE_DTYPE),                      # no-op: weights stored bf16
               b.reshape(1, F).astype(jnp.float32)]
    if residual is not None:
        in_specs.append(pl.BlockSpec((tm, tn), lambda i, j, k: (i, j)))
        inputs.append(residual)

    return pl.pallas_call(
        _make_linear_kernel(do_ln, gelu, residual is not None, LN_EPS),
        out_shape=jax.ShapeDtypeStruct((M, F), out_dtype),
        grid=grid,
        in_specs=in_specs,
        out_specs=pl.BlockSpec((tm, tn), lambda i, j, k: (i, j)),
        scratch_shapes=[pltpu.VMEM((tm, tn), jnp.float32)],
        compiler_params=pltpu.CompilerParams(
            dimension_semantics=("parallel", "parallel", "arbitrary")),
    )(*inputs)


# --------------------------------------------------------- attention core ----
def _make_attn_kernel(n_head: int, dh: int, has_mask: bool):
    D = n_head * dh

    def kernel(*refs):
        if has_mask:
            qkv_ref, mask_ref, o_ref = refs
        else:
            qkv_ref, o_ref = refs
            mask_ref = None
        # Static unroll over heads; each head loads only its (L, dh) q/k/v slabs
        # (static ref slices, never the whole (L, 3D) tile) and stores its result
        # straight into its output columns -> no concatenate, low vreg pressure.
        # TODO(synk): pack pairs of dh=64 heads into 128-lane slabs (or move heads to
        # a grid axis) so the per-head slices never cut an (8,128) tile.
        for h in range(n_head):
            q = qkv_ref[0, :, h * dh:(h + 1) * dh]                 # scale pre-folded
            kh = qkv_ref[0, :, D + h * dh:D + (h + 1) * dh]
            vh = qkv_ref[0, :, 2 * D + h * dh:2 * D + (h + 1) * dh]
            # QK^T without forming K^T: contract the dh axis directly on the MXU.
            s = lax.dot_general(q, kh, (((1,), (1,)), ((), ())),
                                preferred_element_type=jnp.float32)
            if mask_ref is not None:
                s = s + mask_ref[...]
            s = s - jnp.max(s, axis=-1, keepdims=True)
            p = jnp.exp(s)
            p = p * (1.0 / jnp.sum(p, axis=-1, keepdims=True))      # exact reciprocal
            o = jnp.dot(p.astype(vh.dtype), vh, preferred_element_type=jnp.float32)
            o_ref[0, :, h * dh:(h + 1) * dh] = o.astype(o_ref.dtype)

    return kernel


def attention(qkv, attn_mask, n_head, *, out_dtype=COMPUTE_DTYPE):
    # qkv: (N, L, 3*D) packed [q | k | v]; returns (N, L, D) heads merged, lane-dense.
    N, L, threeD = qkv.shape
    D = threeD // 3
    dh = D // n_head
    has_mask = attn_mask is not None
    in_specs = [pl.BlockSpec((1, L, threeD), lambda n: (n, 0, 0))]
    inputs = [qkv]
    if has_mask:
        in_specs.append(pl.BlockSpec((L, L), lambda n: (0, 0)))
        inputs.append(attn_mask.astype(jnp.float32))
    # TODO(synk): for long sequences (L >= ~1.5k on v7x, ~2k on v5e/v6e) switch to a
    # flash-style KV-tiled online-softmax kernel (and a second parallel grid axis over
    # heads / query tiles) so the (L, L) scores never materialize in VMEM.
    return pl.pallas_call(
        _make_attn_kernel(n_head, dh, has_mask),
        out_shape=jax.ShapeDtypeStruct((N, L, D), out_dtype),
        grid=(N,),
        in_specs=in_specs,
        out_specs=pl.BlockSpec((1, L, D), lambda n: (n, 0, 0)),
        compiler_params=pltpu.CompilerParams(dimension_semantics=("parallel",)),
    )(*inputs)


# ------------------------------------------------------- residual attn block --
def resblock_forward(x, p, attn_mask, n_head):
    # x: (N, L, D) fp32 residual stream
    N, L, D = x.shape
    x2d = x.reshape(N * L, D)
    dh = D // n_head
    scale = 1.0 / math.sqrt(dh)

    # Fold the 1/sqrt(dh) attention scale into the q columns of the qkv projection
    # (weights-only op, removes all per-token scale multiplies from the kernels).
    col_scale = jnp.concatenate([jnp.full((D,), scale, jnp.float32),
                                 jnp.ones((2 * D,), jnp.float32)])
    in_w = (p["in_w"].astype(jnp.float32) * col_scale).astype(COMPUTE_DTYPE)
    in_b = p["in_b"].astype(jnp.float32) * col_scale

    # x = x + out_proj(attention(ln_1(x)))       (ln_1 fused into the qkv matmul)
    qkv = fused_linear(x2d, in_w, in_b, ln=(p["ln1_w"], p["ln1_b"]),
                       out_dtype=COMPUTE_DTYPE)
    ao = attention(qkv.reshape(N, L, 3 * D), attn_mask, n_head)
    x2d = fused_linear(ao.reshape(N * L, D), p["out_w"], p["out_b"],
                       residual=x2d, out_dtype=jnp.float32)

    # x = x + c_proj(gelu(c_fc(ln_2(x))))        (ln_2 + exact GELU fused into c_fc)
    hf = fused_linear(x2d, p["fc_w"], p["fc_b"], ln=(p["ln2_w"], p["ln2_b"]),
                      gelu=True, out_dtype=COMPUTE_DTYPE)
    x2d = fused_linear(hf, p["proj_w"], p["proj_b"],
                       residual=x2d, out_dtype=jnp.float32)
    return x2d.reshape(N, L, D)


def transformer_forward(x, params, attn_mask, n_head):
    # x: (L, N, D), like torch nn.MultiheadAttention (batch_first=False)
    x = jnp.transpose(x, (1, 0, 2)).astype(jnp.float32)   # (N, L, D); once per call
    for p in params:
        x = resblock_forward(x, p, attn_mask, n_head)
    return jnp.transpose(x, (1, 0, 2))


# --------------------------------------------------- pure-JAX reference ------
def _ref_layer_norm(x, w, b, eps=LN_EPS):
    m = jnp.mean(x, axis=-1, keepdims=True)
    v = jnp.mean((x - m) ** 2, axis=-1, keepdims=True)
    return (x - m) * lax.rsqrt(v + eps) * w + b


def reference_forward(x, params, attn_mask, n_head):
    L, N, D = x.shape
    H, dh = n_head, D // n_head
    f32 = lambda a: a.astype(jnp.float32)
    for p in params:
        h = _ref_layer_norm(x, f32(p["ln1_w"]), f32(p["ln1_b"]))
        qkv = h @ f32(p["in_w"]) + f32(p["in_b"])
        q, k, v = jnp.split(qkv, 3, axis=-1)
        heads = lambda t: t.reshape(L, N * H, dh).transpose(1, 0, 2)
        q, k, v = heads(q), heads(k), heads(v)
        s = jnp.einsum("bqd,bkd->bqk", q, k) / math.sqrt(dh)
        if attn_mask is not None:
            s = s + attn_mask.astype(jnp.float32)
        o = jnp.einsum("bqk,bkd->bqd", jax.nn.softmax(s, axis=-1), v)
        o = o.transpose(1, 0, 2).reshape(L, N, D)
        x = x + o @ f32(p["out_w"]) + f32(p["out_b"])
        h2 = _ref_layer_norm(x, f32(p["ln2_w"]), f32(p["ln2_b"]))
        hf = jax.nn.gelu(h2 @ f32(p["fc_w"]) + f32(p["fc_b"]), approximate=False)
        x = x + hf @ f32(p["proj_w"]) + f32(p["proj_b"])
    return x


# ---------------------------------------------------------- param init -------
def init_params(key, width, layers, mlp_ratio=4.0, param_dtype=COMPUTE_DTYPE):
    mlp_width = int(width * mlp_ratio)
    params = []
    for li in range(layers):
        ks = jax.random.split(jax.random.fold_in(key, li), 12)
        w = lambda k, s: (0.08 * jax.random.normal(k, s, jnp.float32)).astype(param_dtype)
        b = lambda k, s: 0.02 * jax.random.normal(k, s, jnp.float32)
        params.append(dict(
            ln1_w=1.0 + 0.1 * jax.random.normal(ks[8], (width,), jnp.float32),
            ln1_b=0.05 * jax.random.normal(ks[9], (width,), jnp.float32),
            in_w=w(ks[0], (width, 3 * width)),   in_b=b(ks[1], (3 * width,)),
            out_w=w(ks[2], (width, width)),      out_b=b(ks[3], (width,)),
            ln2_w=1.0 + 0.1 * jax.random.normal(ks[10], (width,), jnp.float32),
            ln2_b=0.05 * jax.random.normal(ks[11], (width,), jnp.float32),
            fc_w=w(ks[4], (width, mlp_width)),   fc_b=b(ks[5], (mlp_width,)),
            proj_w=w(ks[6], (mlp_width, width)), proj_b=b(ks[7], (width,)),
        ))
    return params


# ------------------------------------------------------------------- main ----
if __name__ == "__main__":
    width, layers, heads = 32, 2, 4
    seq_len, batch = 8, 2

    key = jax.random.PRNGKey(0)
    kx, kp = jax.random.split(key)
    x = jax.random.normal(kx, (seq_len, batch, width), jnp.float32)   # (L, N, D)
    params = init_params(kp, width, layers)

    fwd = jax.jit(functools.partial(transformer_forward, n_head=heads))

    # no attention mask
    out = fwd(x, params, None)
    jax.block_until_ready(out)
    assert out.shape == (seq_len, batch, width)
    ref = reference_forward(x, params, None, heads)
    assert float(jnp.max(jnp.abs(out - ref))) < 1e-1

    # causal additive mask (exercises the masked kernel variant)
    causal = jnp.triu(jnp.full((seq_len, seq_len), -jnp.inf, jnp.float32), k=1)
    out_m = fwd(x, params, causal)
    jax.block_until_ready(out_m)
    ref_m = reference_forward(x, params, causal, heads)
    assert float(jnp.max(jnp.abs(out_m - ref_m))) < 1e-1

    print("KERNEL_OK")
</pallas_src>

<mosaic_0001>
module attributes {stable_mosaic.version = 11 : i64} {
  func.func @kernel(%arg0: i32, %arg1: i32, %arg2: i32, %arg3: memref<16x32xf32, #tpu.memory_space<vmem>>, %arg4: memref<1x32xf32, #tpu.memory_space<vmem>>, %arg5: memref<1x32xf32, #tpu.memory_space<vmem>>, %arg6: memref<32x96xbf16, #tpu.memory_space<vmem>>, %arg7: memref<1x96xf32, #tpu.memory_space<vmem>>, %arg8: memref<16x96xbf16, #tpu.memory_space<vmem>>, %arg9: memref<16x96xf32, #tpu.memory_space<vmem>>) attributes {dimension_semantics = [#tpu.dimension_semantics<parallel>, #tpu.dimension_semantics<parallel>, #tpu.dimension_semantics<arbitrary>], iteration_bounds = array<i64: 1, 1, 1>, scalar_prefetch = 0 : i64, scratch_operands = 1 : i64, tpu.core_type = #tpu.core_type<tc>, window_params = [{transform_indices = @transform_0, window_bounds = array<i64: 16, 32>}, {pipeline_mode = #tpu.pipeline_mode<synchronous>, transform_indices = @transform_1, window_bounds = array<i64: 1, 32>}, {pipeline_mode = #tpu.pipeline_mode<synchronous>, transform_indices = @transform_2, window_bounds = array<i64: 1, 32>}, {transform_indices = @transform_3, window_bounds = array<i64: 32, 96>}, {transform_indices = @transform_4, window_bounds = array<i64: 1, 96>}, {transform_indices = @transform_5, window_bounds = array<i64: 16, 96>}]} {
    %c0_i32 = arith.constant 0 : i32
    %0 = arith.cmpi eq, %arg2, %c0_i32 : i32
    %1 = arith.extui %0 : i1 to i32
    %c0_i32_0 = arith.constant 0 : i32
    %2 = arith.cmpi ne, %1, %c0_i32_0 : i32
    scf.if %2 {
      %cst_19 = arith.constant 0.000000e+00 : f32
      %35 = vector.broadcast %cst_19 : f32 to vector<16x96xf32>
      %c0_20 = arith.constant 0 : index
      %c0_21 = arith.constant 0 : index
      %36 = vector.load %arg9[%c0_20, %c0_21] : memref<16x96xf32, #tpu.memory_space<vmem>>, vector<16x96xf32>
      tpu.vector_store %arg9[%c0_20, %c0_21], %35 {strides = array<i32>} : memref<16x96xf32, #tpu.memory_space<vmem>>, vector<16x96xf32>,
    } else {
    }
    %c0 = arith.constant 0 : index
    %c0_1 = arith.constant 0 : index
    %3 = vector.load %arg3[%c0, %c0_1] : memref<16x32xf32, #tpu.memory_space<vmem>>, vector<16x32xf32>
    %cst = arith.constant dense<0.000000e+00> : vector<16xf32>
    %4 = vector.multi_reduction <add>, %3, %cst [1] : vector<16x32xf32> to vector<16xf32>
    %5 = vector.shape_cast %4 : vector<16xf32> to vector<16x1xf32>
    %cst_2 = arith.constant 3.200000e+01 : f32
    %6 = vector.broadcast %cst_2 : f32 to vector<16x1xf32>
    %7 = arith.divf %5, %6 : vector<16x1xf32>
    %8 = vector.broadcast %7 : vector<16x1xf32> to vector<16x32xf32>
    %9 = arith.subf %3, %8 : vector<16x32xf32>
    %10 = arith.mulf %9, %9 : vector<16x32xf32>
    %cst_3 = arith.constant dense<0.000000e+00> : vector<16xf32>
    %11 = vector.multi_reduction <add>, %10, %cst_3 [1] : vector<16x32xf32> to vector<16xf32>
    %12 = vector.shape_cast %11 : vector<16xf32> to vector<16x1xf32>
    %cst_4 = arith.constant 3.200000e+01 : f32
    %13 = vector.broadcast %cst_4 : f32 to vector<16x1xf32>
    %14 = arith.divf %12, %13 : vector<16x1xf32>
    %cst_5 = arith.constant 1.1920929E-7 : f32
    %15 = vector.broadcast %cst_5 : f32 to vector<16x1xf32>
    %16 = arith.addf %14, %15 : vector<16x1xf32>
    %17 = math.rsqrt %16 : vector<16x1xf32>
    %18 = vector.broadcast %17 : vector<16x1xf32> to vector<16x32xf32>
    %19 = arith.mulf %9, %18 : vector<16x32xf32>
    %c0_6 = arith.constant 0 : index
    %c0_7 = arith.constant 0 : index
    %20 = vector.load %arg4[%c0_6, %c0_7] : memref<1x32xf32, #tpu.memory_space<vmem>>, vector<1x32xf32>
    %21 = vector.broadcast %20 : vector<1x32xf32> to vector<16x32xf32>
    %22 = arith.mulf %19, %21 : vector<16x32xf32>
    %c0_8 = arith.constant 0 : index
    %c0_9 = arith.constant 0 : index
    %23 = vector.load %arg5[%c0_8, %c0_9] : memref<1x32xf32, #tpu.memory_space<vmem>>, vector<1x32xf32>
    %24 = vector.broadcast %23 : vector<1x32xf32> to vector<16x32xf32>
    %25 = arith.addf %22, %24 : vector<16x32xf32>
    %26 = arith.truncf %25 : vector<16x32xf32> to vector<16x32xbf16>
    %c0_10 = arith.constant 0 : index
    %c0_11 = arith.constant 0 : index
    %27 = vector.load %arg9[%c0_10, %c0_11] : memref<16x96xf32, #tpu.memory_space<vmem>>, vector<16x96xf32>
    %c0_12 = arith.constant 0 : index
    %c0_13 = arith.constant 0 : index
    %28 = vector.load %arg6[%c0_12, %c0_13] : memref<32x96xbf16, #tpu.memory_space<vmem>>, vector<32x96xbf16>
    %cst_14 = arith.constant dense<0.000000e+00> : vector<16x96xf32>
    %29 = tpu.matmul %26, %28, %cst_14 {dimension_numbers = #tpu.dot_dimension_numbers<[1], [0], [0], [1], [0, 0, 1, 1], [], []>} : vector<16x32xbf16>, vector<32x96xbf16>, vector<16x96xf32> -> vector<16x96xf32>
    %30 = arith.addf %27, %29 : vector<16x96xf32>
    %c0_15 = arith.constant 0 : index
    %c0_16 = arith.constant 0 : index
    %31 = vector.load %arg9[%c0_15, %c0_16] : memref<16x96xf32, #tpu.memory_space<vmem>>, vector<16x96xf32>
    tpu.vector_store %arg9[%c0_15, %c0_16], %30 {strides = array<i32>} : memref<16x96xf32, #tpu.memory_space<vmem>>, vector<16x96xf32>,
    %c0_i32_17 = arith.constant 0 : i32
    %32 = arith.cmpi eq, %arg2, %c0_i32_17 : i32
    %33 = arith.extui %32 : i1 to i32
    %c0_i32_18 = arith.constant 0 : i32
    %34 = arith.cmpi ne, %33, %c0_i32_18 : i32
    scf.if %34 {
      %c0_19 = arith.constant 0 : index
      %c0_20 = arith.constant 0 : index
      %35 = vector.load %arg9[%c0_19, %c0_20] : memref<16x96xf32, #tpu.memory_space<vmem>>, vector<16x96xf32>
      %c0_21 = arith.constant 0 : index
      %c0_22 = arith.constant 0 : index
      %36 = vector.load %arg7[%c0_21, %c0_22] : memref<1x96xf32, #tpu.memory_space<vmem>>, vector<1x96xf32>
      %37 = vector.broadcast %36 : vector<1x96xf32> to vector<16x96xf32>
      %38 = arith.addf %35, %37 : vector<16x96xf32>
      %39 = arith.truncf %38 : vector<16x96xf32> to vector<16x96xbf16>
      %c0_23 = arith.constant 0 : index
      %c0_24 = arith.constant 0 : index
      %40 = vector.load %arg8[%c0_23, %c0_24] : memref<16x96xbf16, #tpu.memory_space<vmem>>, vector<16x96xbf16>
      tpu.vector_store %arg8[%c0_23, %c0_24], %39 {strides = array<i32>} : memref<16x96xbf16, #tpu.memory_space<vmem>>, vector<16x96xbf16>,
    } else {
    }
    return
  }
  func.func @transform_0(%arg0: i32, %arg1: i32, %arg2: i32) -> (i32, i32) {
    %c0_i32 = arith.constant 0 : i32
    return %arg0, %arg2 : i32, i32
  }
  func.func @transform_1(%arg0: i32, %arg1: i32, %arg2: i32) -> (i32, i32) {
    %c0_i32 = arith.constant 0 : i32
    %c0_i32_0 = arith.constant 0 : i32
    %c0_i32_1 = arith.constant 0 : i32
    return %c0_i32, %c0_i32_0 : i32, i32
  }
  func.func @transform_2(%arg0: i32, %arg1: i32, %arg2: i32) -> (i32, i32) {
    %c0_i32 = arith.constant 0 : i32
    %c0_i32_0 = arith.constant 0 : i32
    %c0_i32_1 = arith.constant 0 : i32
    return %c0_i32, %c0_i32_0 : i32, i32
  }
  func.func @transform_3(%arg0: i32, %arg1: i32, %arg2: i32) -> (i32, i32) {
    %c0_i32 = arith.constant 0 : i32
    return %arg2, %arg1 : i32, i32
  }
  func.func @transform_4(%arg0: i32, %arg1: i32, %arg2: i32) -> (i32, i32) {
    %c0_i32 = arith.constant 0 : i32
    %c0_i32_0 = arith.constant 0 : i32
    return %c0_i32, %arg1 : i32, i32
  }
  func.func @transform_5(%arg0: i32, %arg1: i32, %arg2: i32) -> (i32, i32) {
    %c0_i32 = arith.constant 0 : i32
    return %arg0, %arg1 : i32, i32
  }
}

module attributes {stable_mosaic.version = 11 : i64} {
  func.func @kernel(%arg0: i32, %arg1: i32, %arg2: i32, %arg3: memref<16x32xbf16, #tpu.memory_space<vmem>>, %arg4: memref<32x32xbf16, #tpu.memory_space<vmem>>, %arg5: memref<1x32xf32, #tpu.memory_space<vmem>>, %arg6: memref<16x32xf32, #tpu.memory_space<vmem>>, %arg7: memref<16x32xf32, #tpu.memory_space<vmem>>, %arg8: memref<16x32xf32, #tpu.memory_space<vmem>>) attributes {dimension_semantics = [#tpu.dimension_semantics<parallel>, #tpu.dimension_semantics<parallel>, #tpu.dimension_semantics<arbitrary>], iteration_bounds = array<i64: 1, 1, 1>, scalar_prefetch = 0 : i64, scratch_operands = 1 : i64, tpu.core_type = #tpu.core_type<tc>, window_params = [{transform_indices = @transform_0, window_bounds = array<i64: 16, 32>}, {transform_indices = @transform_1, window_bounds = array<i64: 32, 32>}, {transform_indices = @transform_2, window_bounds = array<i64: 1, 32>}, {transform_indices = @transform_3, window_bounds = array<i64: 16, 32>}, {transform_indices = @transform_4, window_bounds = array<i64: 16, 32>}]} {
    %c0_i32 = arith.constant 0 : i32
    %0 = arith.cmpi eq, %arg2, %c0_i32 : i32
    %1 = arith.extui %0 : i1 to i32
    %c0_i32_0 = arith.constant 0 : i32
    %2 = arith.cmpi ne, %1, %c0_i32_0 : i32
    scf.if %2 {
      %cst_10 = arith.constant 0.000000e+00 : f32
      %12 = vector.broadcast %cst_10 : f32 to vector<16x32xf32>
      %c0_11 = arith.constant 0 : index
      %c0_12 = arith.constant 0 : index
      %13 = vector.load %arg8[%c0_11, %c0_12] : memref<16x32xf32, #tpu.memory_space<vmem>>, vector<16x32xf32>
      tpu.vector_store %arg8[%c0_11, %c0_12], %12 {strides = array<i32>} : memref<16x32xf32, #tpu.memory_space<vmem>>, vector<16x32xf32>,
    } else {
    }
    %c0 = arith.constant 0 : index
    %c0_1 = arith.constant 0 : index
    %3 = vector.load %arg3[%c0, %c0_1] : memref<16x32xbf16, #tpu.memory_space<vmem>>, vector<16x32xbf16>
    %c0_2 = arith.constant 0 : index
    %c0_3 = arith.constant 0 : index
    %4 = vector.load %arg8[%c0_2, %c0_3] : memref<16x32xf32, #tpu.memory_space<vmem>>, vector<16x32xf32>
    %c0_4 = arith.constant 0 : index
    %c0_5 = arith.constant 0 : index
    %5 = vector.load %arg4[%c0_4, %c0_5] : memref<32x32xbf16, #tpu.memory_space<vmem>>, vector<32x32xbf16>
    %cst = arith.constant dense<0.000000e+00> : vector<16x32xf32>
    %6 = tpu.matmul %3, %5, %cst {dimension_numbers = #tpu.dot_dimension_numbers<[1], [0], [0], [1], [0, 0, 1, 1], [], []>} : vector<16x32xbf16>, vector<32x32xbf16>, vector<16x32xf32> -> vector<16x32xf32>
    %7 = arith.addf %4, %6 : vector<16x32xf32>
    %c0_6 = arith.constant 0 : index
    %c0_7 = arith.constant 0 : index
    %8 = vector.load %arg8[%c0_6, %c0_7] : memref<16x32xf32, #tpu.memory_space<vmem>>, vector<16x32xf32>
    tpu.vector_store %arg8[%c0_6, %c0_7], %7 {strides = array<i32>} : memref<16x32xf32, #tpu.memory_space<vmem>>, vector<16x32xf32>,
    %c0_i32_8 = arith.constant 0 : i32
    %9 = arith.cmpi eq, %arg2, %c0_i32_8 : i32
    %10 = arith.extui %9 : i1 to i32
    %c0_i32_9 = arith.constant 0 : i32
    %11 = arith.cmpi ne, %10, %c0_i32_9 : i32
    scf.if %11 {
      %c0_10 = arith.constant 0 : index
      %c0_11 = arith.constant 0 : index
      %12 = vector.load %arg8[%c0_10, %c0_11] : memref<16x32xf32, #tpu.memory_space<vmem>>, vector<16x32xf32>
      %c0_12 = arith.constant 0 : index
      %c0_13 = arith.constant 0 : index
      %13 = vector.load %arg5[%c0_12, %c0_13] : memref<1x32xf32, #tpu.memory_space<vmem>>, vector<1x32xf32>
      %14 = vector.broadcast %13 : vector<1x32xf32> to vector<16x32xf32>
      %15 = arith.addf %12, %14 : vector<16x32xf32>
      %c0_14 = arith.constant 0 : index
      %c0_15 = arith.constant 0 : index
      %16 = vector.load %arg6[%c0_14, %c0_15] : memref<16x32xf32, #tpu.memory_space<vmem>>, vector<16x32xf32>
      %17 = arith.addf %15, %16 : vector<16x32xf32>
      %c0_16 = arith.constant 0 : index
      %c0_17 = arith.constant 0 : index
      %18 = vector.load %arg7[%c0_16, %c0_17] : memref<16x32xf32, #tpu.memory_space<vmem>>, vector<16x32xf32>
      tpu.vector_store %arg7[%c0_16, %c0_17], %17 {strides = array<i32>} : memref<16x32xf32, #tpu.memory_space<vmem>>, vector<16x32xf32>,
    } else {
    }
    return
  }
  func.func @transform_0(%arg0: i32, %arg1: i32, %arg2: i32) -> (i32, i32) {
    %c0_i32 = arith.constant 0 : i32
    return %arg0, %arg2 : i32, i32
  }
  func.func @transform_1(%arg0: i32, %arg1: i32, %arg2: i32) -> (i32, i32) {
    %c0_i32 = arith.constant 0 : i32
    return %arg2, %arg1 : i32, i32
  }
  func.func @transform_2(%arg0: i32, %arg1: i32, %arg2: i32) -> (i32, i32) {
    %c0_i32 = arith.constant 0 : i32
    %c0_i32_0 = arith.constant 0 : i32
    return %c0_i32, %arg1 : i32, i32
  }
  func.func @transform_3(%arg0: i32, %arg1: i32, %arg2: i32) -> (i32, i32) {
    %c0_i32 = arith.constant 0 : i32
    return %arg0, %arg1 : i32, i32
  }
  func.func @transform_4(%arg0: i32, %arg1: i32, %arg2: i32) -> (i32, i32) {
    %c0_i32 = arith.constant 0 : i32
    return %arg0, %arg1 : i32, i32
  }
}

module attributes {stable_mosaic.version = 11 : i64} {
  func.func @kernel(%arg0: i32, %arg1: memref<1x8x96xbf16, #tpu.memory_space<vmem>>, %arg2: memref<1x8x32xbf16, #tpu.memory_space<vmem>>) attributes {dimension_semantics = [#tpu.dimension_semantics<parallel>], iteration_bounds = array<i64: 2>, scalar_prefetch = 0 : i64, scratch_operands = 0 : i64, tpu.core_type = #tpu.core_type<tc>, window_params = [{transform_indices = @transform_0, window_bounds = array<i64: 1, 8, 96>}, {transform_indices = @transform_1, window_bounds = array<i64: 1, 8, 32>}]} {
    %c0 = arith.constant 0 : index
    %c0_0 = arith.constant 0 : index
    %c0_1 = arith.constant 0 : index
    %0 = vector.load %arg1[%c0, %c0_0, %c0_1] : memref<1x8x96xbf16, #tpu.memory_space<vmem>>, vector<1x8x8xbf16>
    %1 = vector.shape_cast %0 : vector<1x8x8xbf16> to vector<8x8xbf16>
    %c0_2 = arith.constant 0 : index
    %c0_3 = arith.constant 0 : index
    %c32 = arith.constant 32 : index
    %2 = vector.load %arg1[%c0_2, %c0_3, %c32] : memref<1x8x96xbf16, #tpu.memory_space<vmem>>, vector<1x8x8xbf16>
    %3 = vector.shape_cast %2 : vector<1x8x8xbf16> to vector<8x8xbf16>
    %c0_4 = arith.constant 0 : index
    %c0_5 = arith.constant 0 : index
    %c64 = arith.constant 64 : index
    %4 = vector.load %arg1[%c0_4, %c0_5, %c64] : memref<1x8x96xbf16, #tpu.memory_space<vmem>>, vector<1x8x8xbf16>
    %5 = vector.shape_cast %4 : vector<1x8x8xbf16> to vector<8x8xbf16>
    %cst = arith.constant dense<0.000000e+00> : vector<8x8xf32>
    %6 = tpu.matmul %1, %3, %cst {dimension_numbers = #tpu.dot_dimension_numbers<[1], [1], [0], [0], [0, 0, 1, 0], [], []>} : vector<8x8xbf16>, vector<8x8xbf16>, vector<8x8xf32> -> vector<8x8xf32>
    %cst_6 = arith.constant dense<0xFF800000> : vector<8xf32>
    %7 = vector.multi_reduction <maximumf>, %6, %cst_6 [1] : vector<8x8xf32> to vector<8xf32>
    %8 = vector.shape_cast %7 : vector<8xf32> to vector<8x1xf32>
    %9 = vector.broadcast %8 : vector<8x1xf32> to vector<8x8xf32>
    %10 = arith.subf %6, %9 : vector<8x8xf32>
    %11 = math.exp %10 : vector<8x8xf32>
    %cst_7 = arith.constant dense<0.000000e+00> : vector<8xf32>
    %12 = vector.multi_reduction <add>, %11, %cst_7 [1] : vector<8x8xf32> to vector<8xf32>
    %13 = vector.shape_cast %12 : vector<8xf32> to vector<8x1xf32>
    %cst_8 = arith.constant 1.000000e+00 : f32
    %14 = vector.broadcast %cst_8 : f32 to vector<8x1xf32>
    %15 = arith.divf %14, %13 : vector<8x1xf32>
    %16 = vector.broadcast %15 : vector<8x1xf32> to vector<8x8xf32>
    %17 = arith.mulf %11, %16 : vector<8x8xf32>
    %18 = arith.truncf %17 : vector<8x8xf32> to vector<8x8xbf16>
    %cst_9 = arith.constant dense<0.000000e+00> : vector<8x8xf32>
    %19 = tpu.matmul %18, %5, %cst_9 {dimension_numbers = #tpu.dot_dimension_numbers<[1], [0], [0], [1], [0, 0, 1, 1], [], []>} : vector<8x8xbf16>, vector<8x8xbf16>, vector<8x8xf32> -> vector<8x8xf32>
    %20 = arith.truncf %19 : vector<8x8xf32> to vector<8x8xbf16>
    %c0_10 = arith.constant 0 : index
    %c0_11 = arith.constant 0 : index
    %c0_12 = arith.constant 0 : index
    %21 = vector.load %arg2[%c0_10, %c0_11, %c0_12] : memref<1x8x32xbf16, #tpu.memory_space<vmem>>, vector<1x8x8xbf16>
    %22 = vector.shape_cast %21 : vector<1x8x8xbf16> to vector<8x8xbf16>
    %23 = vector.shape_cast %20 : vector<8x8xbf16> to vector<1x8x8xbf16>
    tpu.vector_store %arg2[%c0_10, %c0_11, %c0_12], %23 {strides = array<i32>} : memref<1x8x32xbf16, #tpu.memory_space<vmem>>, vector<1x8x8xbf16>,
    %c0_13 = arith.constant 0 : index
    %c0_14 = arith.constant 0 : index
    %c8 = arith.constant 8 : index
    %24 = vector.load %arg1[%c0_13, %c0_14, %c8] : memref<1x8x96xbf16, #tpu.memory_space<vmem>>, vector<1x8x8xbf16>
    %25 = vector.shape_cast %24 : vector<1x8x8xbf16> to vector<8x8xbf16>
    %c0_15 = arith.constant 0 : index
    %c0_16 = arith.constant 0 : index
    %c40 = arith.constant 40 : index
    %26 = vector.load %arg1[%c0_15, %c0_16, %c40] : memref<1x8x96xbf16, #tpu.memory_space<vmem>>, vector<1x8x8xbf16>
    %27 = vector.shape_cast %26 : vector<1x8x8xbf16> to vector<8x8xbf16>
    %c0_17 = arith.constant 0 : index
    %c0_18 = arith.constant 0 : index
    %c72 = arith.constant 72 : index
    %28 = vector.load %arg1[%c0_17, %c0_18, %c72] : memref<1x8x96xbf16, #tpu.memory_space<vmem>>, vector<1x8x8xbf16>
    %29 = vector.shape_cast %28 : vector<1x8x8xbf16> to vector<8x8xbf16>
    %cst_19 = arith.constant dense<0.000000e+00> : vector<8x8xf32>
    %30 = tpu.matmul %25, %27, %cst_19 {dimension_numbers = #tpu.dot_dimension_numbers<[1], [1], [0], [0], [0, 0, 1, 0], [], []>} : vector<8x8xbf16>, vector<8x8xbf16>, vector<8x8xf32> -> vector<8x8xf32>
    %cst_20 = arith.constant dense<0xFF800000> : vector<8xf32>
    %31 = vector.multi_reduction <maximumf>, %30, %cst_20 [1] : vector<8x8xf32> to vector<8xf32>
    %32 = vector.shape_cast %31 : vector<8xf32> to vector<8x1xf32>
    %33 = vector.broadcast %32 : vector<8x1xf32> to vector<8x8xf32>
    %34 = arith.subf %30, %33 : vector<8x8xf32>
    %35 = math.exp %34 : vector<8x8xf32>
    %cst_21 = arith.constant dense<0.000000e+00> : vector<8xf32>
    %36 = vector.multi_reduction <add>, %35, %cst_21 [1] : vector<8x8xf32> to vector<8xf32>
    %37 = vector.shape_cast %36 : vector<8xf32> to vector<8x1xf32>
    %cst_22 = arith.constant 1.000000e+00 : f32
    %38 = vector.broadcast %cst_22 : f32 to vector<8x1xf32>
    %39 = arith.divf %38, %37 : vector<8x1xf32>
    %40 = vector.broadcast %39 : vector<8x1xf32> to vector<8x8xf32>
    %41 = arith.mulf %35, %40 : vector<8x8xf32>
    %42 = arith.truncf %41 : vector<8x8xf32> to vector<8x8xbf16>
    %cst_23 = arith.constant dense<0.000000e+00> : vector<8x8xf32>
    %43 = tpu.matmul %42, %29, %cst_23 {dimension_numbers = #tpu.dot_dimension_numbers<[1], [0], [0], [1], [0, 0, 1, 1], [], []>} : vector<8x8xbf16>, vector<8x8xbf16>, vector<8x8xf32> -> vector<8x8xf32>
    %44 = arith.truncf %43 : vector<8x8xf32> to vector<8x8xbf16>
    %c0_24 = arith.constant 0 : index
    %c0_25 = arith.constant 0 : index
    %c8_26 = arith.constant 8 : index
    %45 = vector.load %arg2[%c0_24, %c0_25, %c8_26] : memref<1x8x32xbf16, #tpu.memory_space<vmem>>, vector<1x8x8xbf16>
    %46 = vector.shape_cast %45 : vector<1x8x8xbf16> to vector<8x8xbf16>
    %47 = vector.shape_cast %44 : vector<8x8xbf16> to vector<1x8x8xbf16>
    tpu.vector_store %arg2[%c0_24, %c0_25, %c8_26], %47 {strides = array<i32>} : memref<1x8x32xbf16, #tpu.memory_space<vmem>>, vector<1x8x8xbf16>,
    %c0_27 = arith.constant 0 : index
    %c0_28 = arith.constant 0 : index
    %c16 = arith.constant 16 : index
    %48 = vector.load %arg1[%c0_27, %c0_28, %c16] : memref<1x8x96xbf16, #tpu.memory_space<vmem>>, vector<1x8x8xbf16>
    %49 = vector.shape_cast %48 : vector<1x8x8xbf16> to vector<8x8xbf16>
    %c0_29 = arith.constant 0 : index
    %c0_30 = arith.constant 0 : index
    %c48 = arith.constant 48 : index
    %50 = vector.load %arg1[%c0_29, %c0_30, %c48] : memref<1x8x96xbf16, #tpu.memory_space<vmem>>, vector<1x8x8xbf16>
    %51 = vector.shape_cast %50 : vector<1x8x8xbf16> to vector<8x8xbf16>
    %c0_31 = arith.constant 0 : index
    %c0_32 = arith.constant 0 : index
    %c80 = arith.constant 80 : index
    %52 = vector.load %arg1[%c0_31, %c0_32, %c80] : memref<1x8x96xbf16, #tpu.memory_space<vmem>>, vector<1x8x8xbf16>
    %53 = vector.shape_cast %52 : vector<1x8x8xbf16> to vector<8x8xbf16>
    %cst_33 = arith.constant dense<0.000000e+00> : vector<8x8xf32>
    %54 = tpu.matmul %49, %51, %cst_33 {dimension_numbers = #tpu.dot_dimension_numbers<[1], [1], [0], [0], [0, 0, 1, 0], [], []>} : vector<8x8xbf16>, vector<8x8xbf16>, vector<8x8xf32> -> vector<8x8xf32>
    %cst_34 = arith.constant dense<0xFF800000> : vector<8xf32>
    %55 = vector.multi_reduction <maximumf>, %54, %cst_34 [1] : vector<8x8xf32> to vector<8xf32>
    %56 = vector.shape_cast %55 : vector<8xf32> to vector<8x1xf32>
    %57 = vector.broadcast %56 : vector<8x1xf32> to vector<8x8xf32>
    %58 = arith.subf %54, %57 : vector<8x8xf32>
    %59 = math.exp %58 : vector<8x8xf32>
    %cst_35 = arith.constant dense<0.000000e+00> : vector<8xf32>
    %60 = vector.multi_reduction <add>, %59, %cst_35 [1] : vector<8x8xf32> to vector<8xf32>
    %61 = vector.shape_cast %60 : vector<8xf32> to vector<8x1xf32>
    %cst_36 = arith.constant 1.000000e+00 : f32
    %62 = vector.broadcast %cst_36 : f32 to vector<8x1xf32>
    %63 = arith.divf %62, %61 : vector<8x1xf32>
    %64 = vector.broadcast %63 : vector<8x1xf32> to vector<8x8xf32>
    %65 = arith.mulf %59, %64 : vector<8x8xf32>
    %66 = arith.truncf %65 : vector<8x8xf32> to vector<8x8xbf16>
    %cst_37 = arith.constant dense<0.000000e+00> : vector<8x8xf32>
    %67 = tpu.matmul %66, %53, %cst_37 {dimension_numbers = #tpu.dot_dimension_numbers<[1], [0], [0], [1], [0, 0, 1, 1], [], []>} : vector<8x8xbf16>, vector<8x8xbf16>, vector<8x8xf32> -> vector<8x8xf32>
    %68 = arith.truncf %67 : vector<8x8xf32> to vector<8x8xbf16>
    %c0_38 = arith.constant 0 : index
    %c0_39 = arith.constant 0 : index
    %c16_40 = arith.constant 16 : index
    %69 = vector.load %arg2[%c0_38, %c0_39, %c16_40] : memref<1x8x32xbf16, #tpu.memory_space<vmem>>, vector<1x8x8xbf16>
    %70 = vector.shape_cast %69 : vector<1x8x8xbf16> to vector<8x8xbf16>
    %71 = vector.shape_cast %68 : vector<8x8xbf16> to vector<1x8x8xbf16>
    tpu.vector_store %arg2[%c0_38, %c0_39, %c16_40], %71 {strides = array<i32>} : memref<1x8x32xbf16, #tpu.memory_space<vmem>>, vector<1x8x8xbf16>,
    %c0_41 = arith.constant 0 : index
    %c0_42 = arith.constant 0 : index
    %c24 = arith.constant 24 : index
    %72 = vector.load %arg1[%c0_41, %c0_42, %c24] : memref<1x8x96xbf16, #tpu.memory_space<vmem>>, vector<1x8x8xbf16>
    %73 = vector.shape_cast %72 : vector<1x8x8xbf16> to vector<8x8xbf16>
    %c0_43 = arith.constant 0 : index
    %c0_44 = arith.constant 0 : index
    %c56 = arith.constant 56 : index
    %74 = vector.load %arg1[%c0_43, %c0_44, %c56] : memref<1x8x96xbf16, #tpu.memory_space<vmem>>, vector<1x8x8xbf16>
    %75 = vector.shape_cast %74 : vector<1x8x8xbf16> to vector<8x8xbf16>
    %c0_45 = arith.constant 0 : index
    %c0_46 = arith.constant 0 : index
    %c88 = arith.constant 88 : index
    %76 = vector.load %arg1[%c0_45, %c0_46, %c88] : memref<1x8x96xbf16, #tpu.memory_space<vmem>>, vector<1x8x8xbf16>
    %77 = vector.shape_cast %76 : vector<1x8x8xbf16> to vector<8x8xbf16>
    %cst_47 = arith.constant dense<0.000000e+00> : vector<8x8xf32>
    %78 = tpu.matmul %73, %75, %cst_47 {dimension_numbers = #tpu.dot_dimension_numbers<[1], [1], [0], [0], [0, 0, 1, 0], [], []>} : vector<8x8xbf16>, vector<8x8xbf16>, vector<8x8xf32> -> vector<8x8xf32>
    %cst_48 = arith.constant dense<0xFF800000> : vector<8xf32>
    %79 = vector.multi_reduction <maximumf>, %78, %cst_48 [1] : vector<8x8xf32> to vector<8xf32>
    %80 = vector.shape_cast %79 : vector<8xf32> to vector<8x1xf32>
    %81 = vector.broadcast %80 : vector<8x1xf32> to vector<8x8xf32>
    %82 = arith.subf %78, %81 : vector<8x8xf32>
    %83 = math.exp %82 : vector<8x8xf32>
    %cst_49 = arith.constant dense<0.000000e+00> : vector<8xf32>
    %84 = vector.multi_reduction <add>, %83, %cst_49 [1] : vector<8x8xf32> to vector<8xf32>
    %85 = vector.shape_cast %84 : vector<8xf32> to vector<8x1xf32>
    %cst_50 = arith.constant 1.000000e+00 : f32
    %86 = vector.broadcast %cst_50 : f32 to vector<8x1xf32>
    %87 = arith.divf %86, %85 : vector<8x1xf32>
    %88 = vector.broadcast %87 : vector<8x1xf32> to vector<8x8xf32>
    %89 = arith.mulf %83, %88 : vector<8x8xf32>
    %90 = arith.truncf %89 : vector<8x8xf32> to vector<8x8xbf16>
    %cst_51 = arith.constant dense<0.000000e+00> : vector<8x8xf32>
    %91 = tpu.matmul %90, %77, %cst_51 {dimension_numbers = #tpu.dot_dimension_numbers<[1], [0], [0], [1], [0, 0, 1, 1], [], []>} : vector<8x8xbf16>, vector<8x8xbf16>, vector<8x8xf32> -> vector<8x8xf32>
    %92 = arith.truncf %91 : vector<8x8xf32> to vector<8x8xbf16>
    %c0_52 = arith.constant 0 : index
    %c0_53 = arith.constant 0 : index
    %c24_54 = arith.constant 24 : index
    %93 = vector.load %arg2[%c0_52, %c0_53, %c24_54] : memref<1x8x32xbf16, #tpu.memory_space<vmem>>, vector<1x8x8xbf16>
    %94 = vector.shape_cast %93 : vector<1x8x8xbf16> to vector<8x8xbf16>
    %95 = vector.shape_cast %92 : vector<8x8xbf16> to vector<1x8x8xbf16>
    tpu.vector_store %arg2[%c0_52, %c0_53, %c24_54], %95 {strides = array<i32>} : memref<1x8x32xbf16, #tpu.memory_space<vmem>>, vector<1x8x8xbf16>,
    return
  }
  func.func @transform_0(%arg0: i32) -> (i32, i32, i32) {
    %c0_i32 = arith.constant 0 : i32
    %c0_i32_0 = arith.constant 0 : i32
    %c0_i32_1 = arith.constant 0 : i32
    return %arg0, %c0_i32, %c0_i32_0 : i32, i32, i32
  }
  func.func @transform_1(%arg0: i32) -> (i32, i32, i32) {
    %c0_i32 = arith.constant 0 : i32
    %c0_i32_0 = arith.constant 0 : i32
    %c0_i32_1 = arith.constant 0 : i32
    return %arg0, %c0_i32, %c0_i32_0 : i32, i32, i32
  }
}

module attributes {stable_mosaic.version = 11 : i64} {
  func.func @kernel(%arg0: i32, %arg1: i32, %arg2: i32, %arg3: memref<16x32xf32, #tpu.memory_space<vmem>>, %arg4: memref<1x32xf32, #tpu.memory_space<vmem>>, %arg5: memref<1x32xf32, #tpu.memory_space<vmem>>, %arg6: memref<32x128xbf16, #tpu.memory_space<vmem>>, %arg7: memref<1x128xf32, #tpu.memory_space<vmem>>, %arg8: memref<16x128xbf16, #tpu.memory_space<vmem>>, %arg9: memref<16x128xf32, #tpu.memory_space<vmem>>) attributes {dimension_semantics = [#tpu.dimension_semantics<parallel>, #tpu.dimension_semantics<parallel>, #tpu.dimension_semantics<arbitrary>], iteration_bounds = array<i64: 1, 1, 1>, scalar_prefetch = 0 : i64, scratch_operands = 1 : i64, tpu.core_type = #tpu.core_type<tc>, window_params = [{transform_indices = @transform_0, window_bounds = array<i64: 16, 32>}, {pipeline_mode = #tpu.pipeline_mode<synchronous>, transform_indices = @transform_1, window_bounds = array<i64: 1, 32>}, {pipeline_mode = #tpu.pipeline_mode<synchronous>, transform_indices = @transform_2, window_bounds = array<i64: 1, 32>}, {transform_indices = @transform_3, window_bounds = array<i64: 32, 128>}, {transform_indices = @transform_4, window_bounds = array<i64: 1, 128>}, {transform_indices = @transform_5, window_bounds = array<i64: 16, 128>}]} {
    %c0_i32 = arith.constant 0 : i32
    %0 = arith.cmpi eq, %arg2, %c0_i32 : i32
    %1 = arith.extui %0 : i1 to i32
    %c0_i32_0 = arith.constant 0 : i32
    %2 = arith.cmpi ne, %1, %c0_i32_0 : i32
    scf.if %2 {
      %cst_19 = arith.constant 0.000000e+00 : f32
      %35 = vector.broadcast %cst_19 : f32 to vector<16x128xf32>
      %c0_20 = arith.constant 0 : index
      %c0_21 = arith.constant 0 : index
      %36 = vector.load %arg9[%c0_20, %c0_21] : memref<16x128xf32, #tpu.memory_space<vmem>>, vector<16x128xf32>
      tpu.vector_store %arg9[%c0_20, %c0_21], %35 {strides = array<i32>} : memref<16x128xf32, #tpu.memory_space<vmem>>, vector<16x128xf32>,
    } else {
    }
    %c0 = arith.constant 0 : index
    %c0_1 = arith.constant 0 : index
    %3 = vector.load %arg3[%c0, %c0_1] : memref<16x32xf32, #tpu.memory_space<vmem>>, vector<16x32xf32>
    %cst = arith.constant dense<0.000000e+00> : vector<16xf32>
    %4 = vector.multi_reduction <add>, %3, %cst [1] : vector<16x32xf32> to vector<16xf32>
    %5 = vector.shape_cast %4 : vector<16xf32> to vector<16x1xf32>
    %cst_2 = arith.constant 3.200000e+01 : f32
    %6 = vector.broadcast %cst_2 : f32 to vector<16x1xf32>
    %7 = arith.divf %5, %6 : vector<16x1xf32>
    %8 = vector.broadcast %7 : vector<16x1xf32> to vector<16x32xf32>
    %9 = arith.subf %3, %8 : vector<16x32xf32>
    %10 = arith.mulf %9, %9 : vector<16x32xf32>
    %cst_3 = arith.constant dense<0.000000e+00> : vector<16xf32>
    %11 = vector.multi_reduction <add>, %10, %cst_3 [1] : vector<16x32xf32> to vector<16xf32>
    %12 = vector.shape_cast %11 : vector<16xf32> to vector<16x1xf32>
    %cst_4 = arith.constant 3.200000e+01 : f32
    %13 = vector.broadcast %cst_4 : f32 to vector<16x1xf32>
    %14 = arith.divf %12, %13 : vector<16x1xf32>
    %cst_5 = arith.constant 1.1920929E-7 : f32
    %15 = vector.broadcast %cst_5 : f32 to vector<16x1xf32>
    %16 = arith.addf %14, %15 : vector<16x1xf32>
    %17 = math.rsqrt %16 : vector<16x1xf32>
    %18 = vector.broadcast %17 : vector<16x1xf32> to vector<16x32xf32>
    %19 = arith.mulf %9, %18 : vector<16x32xf32>
    %c0_6 = arith.constant 0 : index
    %c0_7 = arith.constant 0 : index
    %20 = vector.load %arg4[%c0_6, %c0_7] : memref<1x32xf32, #tpu.memory_space<vmem>>, vector<1x32xf32>
    %21 = vector.broadcast %20 : vector<1x32xf32> to vector<16x32xf32>
    %22 = arith.mulf %19, %21 : vector<16x32xf32>
    %c0_8 = arith.constant 0 : index
    %c0_9 = arith.constant 0 : index
    %23 = vector.load %arg5[%c0_8, %c0_9] : memref<1x32xf32, #tpu.memory_space<vmem>>, vector<1x32xf32>
    %24 = vector.broadcast %23 : vector<1x32xf32> to vector<16x32xf32>
    %25 = arith.addf %22, %24 : vector<16x32xf32>
    %26 = arith.truncf %25 : vector<16x32xf32> to vector<16x32xbf16>
    %c0_10 = arith.constant 0 : index
    %c0_11 = arith.constant 0 : index
    %27 = vector.load %arg9[%c0_10, %c0_11] : memref<16x128xf32, #tpu.memory_space<vmem>>, vector<16x128xf32>
    %c0_12 = arith.constant 0 : index
    %c0_13 = arith.constant 0 : index
    %28 = vector.load %arg6[%c0_12, %c0_13] : memref<32x128xbf16, #tpu.memory_space<vmem>>, vector<32x128xbf16>
    %cst_14 = arith.constant dense<0.000000e+00> : vector<16x128xf32>
    %29 = tpu.matmul %26, %28, %cst_14 {dimension_numbers = #tpu.dot_dimension_numbers<[1], [0], [0], [1], [0, 0, 1, 1], [], []>} : vector<16x32xbf16>, vector<32x128xbf16>, vector<16x128xf32> -> vector<16x128xf32>
    %30 = arith.addf %27, %29 : vector<16x128xf32>
    %c0_15 = arith.constant 0 : index
    %c0_16 = arith.constant 0 : index
    %31 = vector.load %arg9[%c0_15, %c0_16] : memref<16x128xf32, #tpu.memory_space<vmem>>, vector<16x128xf32>
    tpu.vector_store %arg9[%c0_15, %c0_16], %30 {strides = array<i32>} : memref<16x128xf32, #tpu.memory_space<vmem>>, vector<16x128xf32>,
    %c0_i32_17 = arith.constant 0 : i32
    %32 = arith.cmpi eq, %arg2, %c0_i32_17 : i32
    %33 = arith.extui %32 : i1 to i32
    %c0_i32_18 = arith.constant 0 : i32
    %34 = arith.cmpi ne, %33, %c0_i32_18 : i32
    scf.if %34 {
      %c0_19 = arith.constant 0 : index
      %c0_20 = arith.constant 0 : index
      %35 = vector.load %arg9[%c0_19, %c0_20] : memref<16x128xf32, #tpu.memory_space<vmem>>, vector<16x128xf32>
      %c0_21 = arith.constant 0 : index
      %c0_22 = arith.constant 0 : index
      %36 = vector.load %arg7[%c0_21, %c0_22] : memref<1x128xf32, #tpu.memory_space<vmem>>, vector<1x128xf32>
      %37 = vector.broadcast %36 : vector<1x128xf32> to vector<16x128xf32>
      %38 = arith.addf %35, %37 : vector<16x128xf32>
      %cst_23 = arith.constant 5.000000e-01 : f32
      %39 = vector.broadcast %cst_23 : f32 to vector<16x128xf32>
      %40 = arith.mulf %39, %38 : vector<16x128xf32>
      %cst_24 = arith.constant 0.707106769 : f32
      %41 = vector.broadcast %cst_24 : f32 to vector<16x128xf32>
      %42 = arith.mulf %38, %41 : vector<16x128xf32>
      %43 = math.absf %42 : vector<16x128xf32>
      %cst_25 = arith.constant 0.327591091 : f32
      %44 = vector.broadcast %cst_25 : f32 to vector<16x128xf32>
      %45 = arith.mulf %44, %43 : vector<16x128xf32>
      %cst_26 = arith.constant 1.000000e+00 : f32
      %46 = vector.broadcast %cst_26 : f32 to vector<16x128xf32>
      %47 = arith.addf %46, %45 : vector<16x128xf32>
      %cst_27 = arith.constant 1.000000e+00 : f32
      %48 = vector.broadcast %cst_27 : f32 to vector<16x128xf32>
      %49 = arith.divf %48, %47 : vector<16x128xf32>
      %cst_28 = arith.constant 1.06140542 : f32
      %50 = vector.broadcast %cst_28 : f32 to vector<16x128xf32>
      %51 = arith.mulf %50, %49 : vector<16x128xf32>
      %cst_29 = arith.constant -1.45315206 : f32
      %52 = vector.broadcast %cst_29 : f32 to vector<16x128xf32>
      %53 = arith.addf %51, %52 : vector<16x128xf32>
      %54 = arith.mulf %53, %49 : vector<16x128xf32>
      %cst_30 = arith.constant 1.42141378 : f32
      %55 = vector.broadcast %cst_30 : f32 to vector<16x128xf32>
      %56 = arith.addf %54, %55 : vector<16x128xf32>
      %57 = arith.mulf %56, %49 : vector<16x128xf32>
      %cst_31 = arith.constant -0.284496725 : f32
      %58 = vector.broadcast %cst_31 : f32 to vector<16x128xf32>
      %59 = arith.addf %57, %58 : vector<16x128xf32>
      %60 = arith.mulf %59, %49 : vector<16x128xf32>
      %cst_32 = arith.constant 0.254829586 : f32
      %61 = vector.broadcast %cst_32 : f32 to vector<16x128xf32>
      %62 = arith.addf %60, %61 : vector<16x128xf32>
      %63 = arith.mulf %62, %49 : vector<16x128xf32>
      %cst_33 = arith.constant 0.000000e+00 : f32
      %64 = vector.broadcast %cst_33 : f32 to vector<16x128xf32>
      %65 = arith.subf %64, %43 : vector<16x128xf32>
      %66 = arith.mulf %65, %43 : vector<16x128xf32>
      %67 = math.exp %66 : vector<16x128xf32>
      %68 = arith.mulf %63, %67 : vector<16x128xf32>
      %cst_34 = arith.constant 1.000000e+00 : f32
      %69 = vector.broadcast %cst_34 : f32 to vector<16x128xf32>
      %70 = arith.subf %69, %68 : vector<16x128xf32>
      %cst_35 = arith.constant 0.000000e+00 : f32
      %71 = vector.broadcast %cst_35 : f32 to vector<16x128xf32>
      %72 = arith.cmpf oge, %42, %71 : vector<16x128xf32>
      %cst_36 = arith.constant 0.000000e+00 : f32
      %73 = vector.broadcast %cst_36 : f32 to vector<16x128xf32>
      %74 = arith.subf %73, %70 : vector<16x128xf32>
      %75 = arith.select %72, %70, %74 : vector<16x128xi1>, vector<16x128xf32>
      %cst_37 = arith.constant 1.000000e+00 : f32
      %76 = vector.broadcast %cst_37 : f32 to vector<16x128xf32>
      %77 = arith.addf %76, %75 : vector<16x128xf32>
      %78 = arith.mulf %40, %77 : vector<16x128xf32>
      %79 = arith.truncf %78 : vector<16x128xf32> to vector<16x128xbf16>
      %c0_38 = arith.constant 0 : index
      %c0_39 = arith.constant 0 : index
      %80 = vector.load %arg8[%c0_38, %c0_39] : memref<16x128xbf16, #tpu.memory_space<vmem>>, vector<16x128xbf16>
      tpu.vector_store %arg8[%c0_38, %c0_39], %79 {strides = array<i32>} : memref<16x128xbf16, #tpu.memory_space<vmem>>, vector<16x128xbf16>,
    } else {
    }
    return
  }
  func.func @transform_0(%arg0: i32, %arg1: i32, %arg2: i32) -> (i32, i32) {
    %c0_i32 = arith.constant 0 : i32
    return %arg0, %arg2 : i32, i32
  }
  func.func @transform_1(%arg0: i32, %arg1: i32, %arg2: i32) -> (i32, i32) {
    %c0_i32 = arith.constant 0 : i32
    %c0_i32_0 = arith.constant 0 : i32
    %c0_i32_1 = arith.constant 0 : i32
    return %c0_i32, %c0_i32_0 : i32, i32
  }
  func.func @transform_2(%arg0: i32, %arg1: i32, %arg2: i32) -> (i32, i32) {
    %c0_i32 = arith.constant 0 : i32
    %c0_i32_0 = arith.constant 0 : i32
    %c0_i32_1 = arith.constant 0 : i32
    return %c0_i32, %c0_i32_0 : i32, i32
  }
  func.func @transform_3(%arg0: i32, %arg1: i32, %arg2: i32) -> (i32, i32) {
    %c0_i32 = arith.constant 0 : i32
    return %arg2, %arg1 : i32, i32
  }
  func.func @transform_4(%arg0: i32, %arg1: i32, %arg2: i32) -> (i32, i32) {
    %c0_i32 = arith.constant 0 : i32
    %c0_i32_0 = arith.constant 0 : i32
    return %c0_i32, %arg1 : i32, i32
  }
  func.func @transform_5(%arg0: i32, %arg1: i32, %arg2: i32) -> (i32, i32) {
    %c0_i32 = arith.constant 0 : i32
    return %arg0, %arg1 : i32, i32
  }
}

module attributes {stable_mosaic.version = 11 : i64} {
  func.func @kernel(%arg0: i32, %arg1: i32, %arg2: i32, %arg3: memref<16x128xbf16, #tpu.memory_space<vmem>>, %arg4: memref<128x32xbf16, #tpu.memory_space<vmem>>, %arg5: memref<1x32xf32, #tpu.memory_space<vmem>>, %arg6: memref<16x32xf32, #tpu.memory_space<vmem>>, %arg7: memref<16x32xf32, #tpu.memory_space<vmem>>, %arg8: memref<16x32xf32, #tpu.memory_space<vmem>>) attributes {dimension_semantics = [#tpu.dimension_semantics<parallel>, #tpu.dimension_semantics<parallel>, #tpu.dimension_semantics<arbitrary>], iteration_bounds = array<i64: 1, 1, 1>, scalar_prefetch = 0 : i64, scratch_operands = 1 : i64, tpu.core_type = #tpu.core_type<tc>, window_params = [{transform_indices = @transform_0, window_bounds = array<i64: 16, 128>}, {transform_indices = @transform_1, window_bounds = array<i64: 128, 32>}, {transform_indices = @transform_2, window_bounds = array<i64: 1, 32>}, {transform_indices = @transform_3, window_bounds = array<i64: 16, 32>}, {transform_indices = @transform_4, window_bounds = array<i64: 16, 32>}]} {
    %c0_i32 = arith.constant 0 : i32
    %0 = arith.cmpi eq, %arg2, %c0_i32 : i32
    %1 = arith.extui %0 : i1 to i32
    %c0_i32_0 = arith.constant 0 : i32
    %2 = arith.cmpi ne, %1, %c0_i32_0 : i32
    scf.if %2 {
      %cst_10 = arith.constant 0.000000e+00 : f32
      %12 = vector.broadcast %cst_10 : f32 to vector<16x32xf32>
      %c0_11 = arith.constant 0 : index
      %c0_12 = arith.constant 0 : index
      %13 = vector.load %arg8[%c0_11, %c0_12] : memref<16x32xf32, #tpu.memory_space<vmem>>, vector<16x32xf32>
      tpu.vector_store %arg8[%c0_11, %c0_12], %12 {strides = array<i32>} : memref<16x32xf32, #tpu.memory_space<vmem>>, vector<16x32xf32>,
    } else {
    }
    %c0 = arith.constant 0 : index
    %c0_1 = arith.constant 0 : index
    %3 = vector.load %arg3[%c0, %c0_1] : memref<16x128xbf16, #tpu.memory_space<vmem>>, vector<16x128xbf16>
    %c0_2 = arith.constant 0 : index
    %c0_3 = arith.constant 0 : index
    %4 = vector.load %arg8[%c0_2, %c0_3] : memref<16x32xf32, #tpu.memory_space<vmem>>, vector<16x32xf32>
    %c0_4 = arith.constant 0 : index
    %c0_5 = arith.constant 0 : index
    %5 = vector.load %arg4[%c0_4, %c0_5] : memref<128x32xbf16, #tpu.memory_space<vmem>>, vector<128x32xbf16>
    %cst = arith.constant dense<0.000000e+00> : vector<16x32xf32>
    %6 = tpu.matmul %3, %5, %cst {dimension_numbers = #tpu.dot_dimension_numbers<[1], [0], [0], [1], [0, 0, 1, 1], [], []>} : vector<16x128xbf16>, vector<128x32xbf16>, vector<16x32xf32> -> vector<16x32xf32>
    %7 = arith.addf %4, %6 : vector<16x32xf32>
    %c0_6 = arith.constant 0 : index
    %c0_7 = arith.constant 0 : index
    %8 = vector.load %arg8[%c0_6, %c0_7] : memref<16x32xf32, #tpu.memory_space<vmem>>, vector<16x32xf32>
    tpu.vector_store %arg8[%c0_6, %c0_7], %7 {strides = array<i32>} : memref<16x32xf32, #tpu.memory_space<vmem>>, vector<16x32xf32>,
    %c0_i32_8 = arith.constant 0 : i32
    %9 = arith.cmpi eq, %arg2, %c0_i32_8 : i32
    %10 = arith.extui %9 : i1 to i32
    %c0_i32_9 = arith.constant 0 : i32
    %11 = arith.cmpi ne, %10, %c0_i32_9 : i32
    scf.if %11 {
      %c0_10 = arith.constant 0 : index
      %c0_11 = arith.constant 0 : index
      %12 = vector.load %arg8[%c0_10, %c0_11] : memref<16x32xf32, #tpu.memory_space<vmem>>, vector<16x32xf32>
      %c0_12 = arith.constant 0 : index
      %c0_13 = arith.constant 0 : index
      %13 = vector.load %arg5[%c0_12, %c0_13] : memref<1x32xf32, #tpu.memory_space<vmem>>, vector<1x32xf32>
      %14 = vector.broadcast %13 : vector<1x32xf32> to vector<16x32xf32>
      %15 = arith.addf %12, %14 : vector<16x32xf32>
      %c0_14 = arith.constant 0 : index
      %c0_15 = arith.constant 0 : index
      %16 = vector.load %arg6[%c0_14, %c0_15] : memref<16x32xf32, #tpu.memory_space<vmem>>, vector<16x32xf32>
      %17 = arith.addf %15, %16 : vector<16x32xf32>
      %c0_16 = arith.constant 0 : index
      %c0_17 = arith.constant 0 : index
      %18 = vector.load %arg7[%c0_16, %c0_17] : memref<16x32xf32, #tpu.memory_space<vmem>>, vector<16x32xf32>
      tpu.vector_store %arg7[%c0_16, %c0_17], %17 {strides = array<i32>} : memref<16x32xf32, #tpu.memory_space<vmem>>, vector<16x32xf32>,
    } else {
    }
    return
  }
  func.func @transform_0(%arg0: i32, %arg1: i32, %arg2: i32) -> (i32, i32) {
    %c0_i32 = arith.constant 0 : i32
    return %arg0, %arg2 : i32, i32
  }
  func.func @transform_1(%arg0: i32, %arg1: i32, %arg2: i32) -> (i32, i32) {
    %c0_i32 = arith.constant 0 : i32
    return %arg2, %arg1 : i32, i32
  }
  func.func @transform_2(%arg0: i32, %arg1: i32, %arg2: i32) -> (i32, i32) {
    %c0_i32 = arith.constant 0 : i32
    %c0_i32_0 = arith.constant 0 : i32
    return %c0_i32, %arg1 : i32, i32
  }
  func.func @transform_3(%arg0: i32, %arg1: i32, %arg2: i32) -> (i32, i32) {
    %c0_i32 = arith.constant 0 : i32
    return %arg0, %arg1 : i32, i32
  }
  func.func @transform_4(%arg0: i32, %arg1: i32, %arg2: i32) -> (i32, i32) {
    %c0_i32 = arith.constant 0 : i32
    return %arg0, %arg1 : i32, i32
  }
}

</mosaic_0001>

<bundles_post_ra>
// kernel: transformer_forward.10
= control target key start
LH: loop header
LB: loop body
LE: loop exit
PB: predicated region body
PF: predicated region fallthrough
CT: control target
= control target key end

     0   :  { %vm30_vm0 = vcmask 261120   ;;  %v202_v15 = vmov 0.0   ;;  %vm203_vm1 = vmmov 0   ;;  %vm25_vm2 = vcmask 785408   ;;  %s270_s0 = inlined_call_operand.vmem [shape: f32[16,32], index: 0, kind: input, shape index: {}]   ;;  %s271_s3 = inlined_call_operand.vmem [shape: bf16[32,96], index: 3, kind: input, shape index: {}]   ;;  %s272_s1 = inlined_call_operand.vmem [shape: f32[1,32], index: 1, kind: input, shape index: {}]   ;;  %s273_s2 = inlined_call_operand.vmem [shape: f32[1,32], index: 2, kind: input, shape index: {}]   ;;  %s274_s4 = inlined_call_operand.vmem [shape: f32[1,96], index: 4, kind: input, shape index: {}]   ;;  %s275_s5 = inlined_call_operand.vmem [shape: bf16[16,96], index: 5, kind: output, shape index: {}]  }
   0x1   :  { %v28_v0 = vld [vmem:[%s270_s0] sm:$0xff]  ;;  %v29_v1 = vld [vmem:[%s270_s0 + $0x8] sm:$0xff]  ;;  %186 = vmatprep.subr.bf16.mxu0 %v202_v15  ;;  %190 = vmatprep.mubr.msk.bf16.mxu0 %vm203_vm1, %v202_v15  ;;  %26 = vst.msk [vmem:[#allocation2] sm:$0xff] %vm25_vm2, %v202_v15  ;;  %27 = vst.msk [vmem:[#allocation2 + $0x8] sm:$0xff] %vm25_vm2, %v202_v15  ;;  %vm166_vm3 = vcmask 781312  }
   0x2   :  { %v31_v2 = vsel %vm30_vm0, %v28_v0, 0.0  ;;  %v34_v3 = vsel %vm30_vm0, %v29_v1, 0.0  ;;  %v196_v14 = vld [vmem:[%s271_s3] sm:$0xff]   ;;  %v197_v16 = vld [vmem:[%s271_s3 + $0x8] sm:$0xff]  }
   0x3   :  { %32 = vadd.xlane.f32.xlu0 %v31_v2  ;;  %187 = vmatpush3.bf16.msra.mxu0 %v196_v14  ;;  %v173_v25 = vld [vmem:[%s272_s1] ss:$0 sm:$0xff] }
   0x4   :  { %188 = vmatprep.subr.bf16.mxu0 %v202_v15  ;;  %v174_v29 = vld [vmem:[%s273_s2] ss:$0 sm:$0xff] }
   0x5   :  { %v178_v42 = vld [vmem:[%s274_s4] ss:$0 sm:$0xff] }
   0x7   :  { %35 = vadd.xlane.f32.xlu0 %v34_v3  ;;  %189 = vmatpush3.bf16.msra.mxu0 %v197_v16 }
   0x8   :  { %v77_v34 = vld [vmem:[#allocation2] sm:$0xff]  ;;  %v78_v36 = vld [vmem:[#allocation2 + $0x8] sm:$0xff] }
  0x90   :  { %v33_v4 = vpop.xlane.xlu0 %32 }
  0x91   :  { %v38_v5 = vmul.f32 0.03125, %v33_v4 }
  0x93   :  { %v40_v6 = vsub.f32 %v28_v0, %v38_v5 }
  0x94   :  { %v36_v7 = vpop.xlane.xlu0 %35 }
  0x95   :  { %v39_v8 = vmul.f32 0.03125, %v36_v7  ;;  %v42_v9 = vmul.f32 %v40_v6, %v40_v6 }
  0x97   :  { %v41_v10 = vsub.f32 %v29_v1, %v39_v8  ;;  %v44_v11 = vsel %vm30_vm0, %v42_v9, 0.0 }
  0x98   :  { %45 = vadd.xlane.f32.xlu1 %v44_v11 }
  0x99   :  { %v43_v12 = vmul.f32 %v41_v10, %v41_v10 }
  0x9b   :  { %v47_v13 = vsel %vm30_vm0, %v43_v12, 0.0 }
  0x9c   :  { %48 = vadd.xlane.f32.xlu1 %v47_v13 }
 0x125   :  { %v46_v17 = vpop.xlane.xlu1 %45 }
 0x126   :  { %v50_v18 = vmul.f32 0.03125, %v46_v17 }
 0x128   :  { %v52_v19 = vadd.f32 1.1920929e-07, %v50_v18 }
 0x129   :  { %v49_v20 = vpop.xlane.xlu1 %48 }
 0x12a   :  { %198 = vrsqrt.f32 %v52_v19  ;;  %v51_v21 = vmul.f32 0.03125, %v49_v20 }
 0x12c   :  { %v53_v22 = vadd.f32 1.1920929e-07, %v51_v21 }
 0x12e   :  { %200 = vrsqrt.f32 %v53_v22 }
 0x134   :  { %v199_v23 = vpop.eup %198 }
 0x135   :  { %v56_v24 = vmul.f32 %v199_v23, %v40_v6 }
 0x137   :  { %v65_v28 = vmul.f32 %v173_v25, %v56_v24 }
 0x138   :  { %v201_v26 = vpop.eup %200 }
 0x139   :  { %v57_v27 = vmul.f32 %v201_v26, %v41_v10  ;;  %v74_v31 = vadd.f32 %v174_v29, %v65_v28 }
 0x13b   :  { %v66_v30 = vmul.f32 %v173_v25, %v57_v27 }
 0x13d   :  { %v75_v32 = vadd.f32 %v174_v29, %v66_v30 }
 0x13f   :  { %v76_v33 = vpack.c.bf16 %v75_v32, %v74_v31 }
 0x141   :  { %191 = vmatmul.mubr.msk.bf16.vlgmr.msra.gmra.mrb[0].mxu0 %vm30_vm0, %v76_v33 }
 0x214   :  { %v132_v35 = vpop.f32.mrb[0].mxu0 }
 0x215   :  { %v139_v37 = vadd.f32 %v132_v35, %v77_v34  ;;  %v192_v38 = vpop.f32.mrb[1].mxu0 }
 0x216   :  { %v135_v39 = vpop.f32.mrb[2].mxu0 }
 0x217   :  { %142 = vst.msk [vmem:[#allocation2] sm:$0xff] %vm25_vm2, %v139_v37  ;;  %v140_v40 = vadd.f32 %v135_v39, %v78_v36  ;;  %v193_v41 = vpop.f32.mrb[3].mxu0 }
 0x219   :  { %143 = vst.msk [vmem:[#allocation2 + $0x8] sm:$0xff] %vm25_vm2, %v140_v40 }
 0x21e   :  { %v147_v43 = vld [vmem:[#allocation2] sm:$0xff] }
 0x21f   :  { %v156_v44 = vadd.f32 %v178_v42, %v147_v43 }
 0x220   :  { %v148_v45 = vld [vmem:[#allocation2 + $0x8] sm:$0xff] }
 0x221   :  { %v181_v46 = vpack.c.bf16 %v156_v44, %v156_v44  ;;  %v157_v47 = vadd.f32 %v178_v42, %v148_v45 }
 0x223   :  { %167 = vst.msk [vmem:[%s275_s5] sm:$0xf] %vm166_vm3, %v181_v46  ;;  %v182_v48 = vpack.c.bf16 %v157_v47, %v157_v47 }
 0x225   :  { %168 = vst.msk [vmem:[%s275_s5 + $0x4] sm:$0xf] %vm166_vm3, %v182_v48 }

// kernel: transformer_forward.12
= control target key start
LH: loop header
LB: loop body
LE: loop exit
PB: predicated region body
PF: predicated region fallthrough
CT: control target
= control target key end

     0   :  { %vm22_vm0 = vcmask 261120   ;;  %v144_v0 = vmov 0.0   ;;  %vm145_vm1 = vmmov 0   ;;  %s202_s1 = inlined_call_operand.vmem [shape: bf16[32,32], index: 1, kind: input, shape index: {}]   ;;  %s203_s0 = inlined_call_operand.vmem [shape: bf16[16,32], index: 0, kind: input, shape index: {}]   ;;  %s204_s2 = inlined_call_operand.vmem [shape: f32[1,32], index: 2, kind: input, shape index: {}]   ;;  %s205_s3 = inlined_call_operand.vmem [shape: f32[16,32], index: 3, kind: input, shape index: {}]   ;;  %s206_s4 = inlined_call_operand.vmem [shape: f32[16,32], index: 4, kind: output, shape index: {}]  }
   0x1   :  { %131 = vmatprep.subr.bf16.mxu0 %v144_v0  ;;  %v141_v1 = vld [vmem:[%s202_s1] sm:$0xff]   ;;  %135 = vmatprep.mubr.msk.bf16.mxu0 %vm145_vm1, %v144_v0  ;;  %23 = vst.msk [vmem:[#allocation2] sm:$0xff] %vm22_vm0, %v144_v0  ;;  %24 = vst.msk [vmem:[#allocation2 + $0x8] sm:$0xff] %vm22_vm0, %v144_v0  ;;  %v142_v2 = vld [vmem:[%s202_s1 + $0x8] sm:$0xff]  }
   0x2   :  { %132 = vmatpush3.bf16.msra.mxu0 %v141_v1  ;;  %v143_v3 = vld [vmem:[%s203_s0] sm:$0xff]   ;;  %v114_v17 = vld [vmem:[%s205_s3 + $0x8] sm:$0xff] }
   0x3   :  { %133 = vmatprep.subr.bf16.mxu0 %v144_v0  ;;  %v127_v12 = vld [vmem:[%s204_s2] ss:$0 sm:$0xff] }
   0x4   :  { %v113_v14 = vld [vmem:[%s205_s3] sm:$0xff] }
   0x6   :  { %134 = vmatpush3.bf16.msra.mxu0 %v142_v2 }
   0x8   :  { %v27_v4 = vld [vmem:[#allocation2] sm:$0xff]  ;;  %v28_v6 = vld [vmem:[#allocation2 + $0x8] sm:$0xff] }
   0x9   :  { %136 = vmatmul.mubr.msk.bf16.vlgmr.msra.gmra.mrb[0].mxu0 %vm22_vm0, %v143_v3 }
  0xdc   :  { %v88_v5 = vpop.f32.mrb[0].mxu0 }
  0xdd   :  { %v95_v7 = vadd.f32 %v88_v5, %v27_v4  ;;  %v137_v8 = vpop.f32.mrb[1].mxu0 }
  0xde   :  { %v91_v9 = vpop.f32.mrb[2].mxu0 }
  0xdf   :  { %97 = vst.msk [vmem:[#allocation2] sm:$0xff] %vm22_vm0, %v95_v7  ;;  %v96_v10 = vadd.f32 %v91_v9, %v28_v6  ;;  %v138_v11 = vpop.f32.mrb[3].mxu0 }
  0xe1   :  { %98 = vst.msk [vmem:[#allocation2 + $0x8] sm:$0xff] %vm22_vm0, %v96_v10 }
  0xe6   :  { %v102_v13 = vld [vmem:[#allocation2] sm:$0xff] }
  0xe7   :  { %v111_v15 = vadd.f32 %v127_v12, %v102_v13 }
  0xe8   :  { %v103_v16 = vld [vmem:[#allocation2 + $0x8] sm:$0xff] }
  0xe9   :  { %v115_v18 = vadd.f32 %v113_v14, %v111_v15  ;;  %v112_v19 = vadd.f32 %v127_v12, %v103_v16 }
  0xeb   :  { %117 = vst.msk [vmem:[%s206_s4] sm:$0xff] %vm22_vm0, %v115_v18  ;;  %v116_v20 = vadd.f32 %v114_v17, %v112_v19 }
  0xed   :  { %118 = vst.msk [vmem:[%s206_s4 + $0x8] sm:$0xff] %vm22_vm0, %v116_v20 }

// kernel: transformer_forward.11
= control target key start
LH: loop header
LB: loop body
LE: loop exit
PB: predicated region body
PF: predicated region fallthrough
CT: control target
= control target key end

     0   :  { %s825_s6 = smov 0   ;;  %s924_s0 = inlined_call_operand.vmem [shape: bf16[2,8,96], index: 0, kind: input, shape index: {}]   ;;  %s925_s1 = inlined_call_operand.vmem [shape: bf16[2,8,32], index: 1, kind: output, shape index: {}]  }
   0x1 LB: > { %s656_s7 = sadd.s32 4294967295, %s797_s6   ;;  %p660_p0 = scmp.ge.s32.totalorder %s797_s6, 1  ;;  %s797_s6 = sphi %s825_s6, %s11_s6  }
   0x2   : > { %p86_p1 = scmp.lt.s32.totalorder %s797_s6, 3 }
   0x4   : > { %p87_p2 = pnand %p660_p0, %p86_p1 }
   0x5   : > { %p104_p3 = scmp.lt.s32.totalorder (!%p87_p2), %s656_s7, 1  ;;  %v799_v0 = vmov (!%p87_p2), 0.0   ;;  %vm800_vm0 = vmmov (!%p87_p2), 0   ;;  %s801_s12 = smov (!%p87_p2), 96   ;;  %vm119_vm1 = vcmask (!%p87_p2), 64512   ;;  %vm184_vm2 = vcmask (!%p87_p2), 1043456  }
   0x6   : > { %90 = sbr.rel (%p87_p2) target bundleno = 1597 (0x63d), region = 24  ;;  %699 = vmatprep.subr.bf16.mxu0 (!%p87_p2), %v799_v0  ;;  %701 = vmatprep.mubr.msk.bf16.mxu0 (!%p87_p2), %vm800_vm0, %v799_v0  ;;  %s802_s13 = smov (!%p87_p2), 64   ;;  %vm229_vm3 = vcmask (!%p87_p2), 60416   ;;  %vm353_vm4 = vcmask (!%p87_p2), 126016   ;;  %vm477_vm5 = vcmask (!%p87_p2), 191616   ;;  %vm601_vm6 = vcmask (!%p87_p2), 257216  }
   0x7   : > { %705 = vmatprep.subr.bf16.mxu1 (!%p87_p2), %v799_v0  ;;  %707 = vmatprep.mubr.msk.bf16.mxu1 (!%p87_p2), %vm800_vm0, %v799_v0  ;;  %s803_s14 = smov (!%p87_p2), 88   ;;  %s804_s15 = smov (!%p87_p2), 72  }
   0x8   : > { %s805_s16 = smov (!%p87_p2), 120   ;;  %s806_s17 = smov (!%p87_p2), 80  }
   0x9   : > { %s807_s18 = smov (!%p87_p2), 112   ;;  %s808_s19 = smov (!%p87_p2), 104  }
   0xa   : > { %s809_s23 = smov (!%p87_p2), 56   ;;  %s810_s24 = smov (!%p87_p2), 48  }
   0xb   : > { %s811_s25 = smov (!%p87_p2), 40   ;;  %s812_s26 = smov (!%p87_p2), 8  }
   0xc   : > { %s813_s27 = smov (!%p87_p2), 16   ;;  %s814_s28 = smov (!%p87_p2), 24  }
   0xd   : > { %s927_s7 = smov (!%p104_p3, %s656_s7), 1 }
   0xe   : > { %s661_s8 = sshll.u32 %s927_s7, 2 }
   0xf   : > { %s847_s11 = scalar_lea.vmem %s924_s0, %s661_s8  ;;  %s894_s22 = scalar_lea.vmem %s925_s1, %s661_s8 }
  0x10   : > { %v113_v1 = vld [vmem:[%s847_s11] sm:$0xf] }
  0x11   : > { %v663_v2 = vcombine.low %v113_v1, %v113_v1  ;;  %v856_v5 = vld [vmem:[%s847_s11] ss:$0 sps:$4 sm:$0xff]  }
  0x12   : > { %v861_v11 = vld [vmem:[%s847_s11] ss:$0 sps:$4 sm:$0xff]  }
  0x13   : > { %117 = vrot.lane.b32.xlu0 %v663_v2, %s801_s12  ;;  %179 = vrot.lane.b32.xlu1 %v663_v2, %s802_s13  ;;  %v869_v19 = vld [vmem:[%s847_s11] ss:$0 sps:$4 sm:$0xff]  }
  0x17   : > { %237 = vrot.lane.b32.xlu1 %v856_v5, %s803_s14 }
  0x85   : > { %v118_v3 = vpop.permute.xlu0 %117  ;;  %v180_v12 = vpop.permute.xlu1 %179 }
  0x86   : > { %v124_v4 = vsel %vm119_vm1, %v118_v3, 0  ;;  %v186_v13 = vsel %vm184_vm2, %v180_v12, 0 }
  0x87   : > { %700 = vmatpush3.bf16.xpose.msra.mxu0 %v124_v4  ;;  %706 = vmatpush3.bf16.msra.mxu1 %v186_v13 }
  0x88   : > { %717 = vmatprep.subr.bf16.mxu0 %v799_v0  ;;  %711 = vmatprep.subr.bf16.mxu1 %v799_v0 }
  0x89   : > { %v238_v20 = vpop.permute.xlu1 %237 }
  0x8a   : > { %v243_v26 = vsel %vm119_vm1, %v238_v20, 0 }
  0x8e   : > { %702 = vmatmul.mubr.msk.bf16.vlgmr.msra.gmra.mrb[0].mxu0 %vm119_vm1, %v113_v1 }
  0x8f   : > { %719 = vmatprep.mubr.msk.bf16.mxu0 %vm800_vm0, %v799_v0 }
 0x161   : > { %v160_v6 = vpop.f32.mrb[0].mxu0 }
 0x162   : > { %v703_v7 = vpop.f32.mrb[1].mxu0  ;;  %v166_v8 = vsel %vm119_vm1, %v160_v6, -inf }
 0x163   : > { %167 = vmax.xlane.f32.xlu0 %v166_v8  ;;  %v163_v9 = vpop.f32.mrb[2].mxu0 }
 0x164   : > { %v704_v10 = vpop.f32.mrb[3].mxu0 }
 0x179   : > { %485 = vrot.lane.b32.xlu0 %v861_v11, %s804_s15 }
 0x1f0   : > { %v168_v14 = vpop.xlane.xlu0 %167 }
 0x1f1   : > { %v169_v15 = vsub.f32 %v160_v6, %v168_v14 }
 0x1f3   : > { %v170_v16 = vmul.f32 1.442695, %v169_v15 }
 0x1f4   : > { %v486_v29 = vpop.permute.xlu0 %485 }
 0x1f5   : > { %775 = vpow2.f32 %v170_v16  ;;  %v491_v31 = vsel %vm119_vm1, %v486_v29, 0 }
 0x1ff   : > { %v776_v17 = vpop.eup %775 }
 0x200   : > { %v172_v18 = vsel %vm119_vm1, %v776_v17, 0.0 }
 0x201   : > { %173 = vadd.xlane.f32.xlu1 %v172_v18 }
 0x212   : > { %235 = vrot.lane.b32.xlu1 %v856_v5, %s805_s16 }
 0x216   : > { %361 = vrot.lane.b32.xlu1 %v869_v19, %s806_s17 }
 0x21a   : > { %359 = vrot.lane.b32.xlu1 %v869_v19, %s807_s18 }
 0x21e   : > { %483 = vrot.lane.b32.xlu1 %v861_v11, %s808_s19 }
 0x28e   : > { %v174_v21 = vpop.xlane.xlu1 %173 }
 0x28f   : > { %777 = vrcp.f32 %v174_v21 }
 0x292   : > { %v236_v24 = vpop.permute.xlu1 %235 }
 0x296   : > { %v362_v27 = vpop.permute.xlu1 %361 }
 0x297   : > { %v367_v28 = vsel %vm119_vm1, %v362_v27, 0 }
 0x299   : > { %v778_v22 = vpop.eup %777 }
 0x29a   : > { %v177_v23 = vmul.f32 %v778_v22, %v776_v17  ;;  %v360_v30 = vpop.permute.xlu1 %359 }
 0x29c   : > { %v178_v25 = vpack.c.bf16 %v177_v23, %v177_v23 }
 0x29e   : > { %708 = vmatmul.mubr.msk.bf16.vlgmr.msra.gmra.mrb[0].mxu1 %vm119_vm1, %v178_v25  ;;  %v484_v32 = vpop.permute.xlu1 %483 }
 0x29f   : > { %712 = vmatpush3.bf16.xpose.msra.mxu1 %v243_v26  ;;  %713 = vmatprep.mubr.msk.bf16.mxu1 %vm800_vm0, %v799_v0 }
 0x2a0   : > { %723 = vmatprep.subr.bf16.mxu1 %v799_v0 }
 0x2a6   : > { %714 = vmatmul.mubr.msk.bf16.vlgmr.msra.gmra.mrb[4].mxu1 %vm119_vm1, %v236_v24 }
 0x2a7   : > { %724 = vmatpush3.bf16.xpose.msra.mxu1 %v367_v28  ;;  %725 = vmatprep.mubr.msk.bf16.mxu1 %vm800_vm0, %v799_v0 }
 0x2a8   : > { %735 = vmatprep.subr.bf16.mxu1 %v799_v0 }
 0x2ae   : > { %726 = vmatmul.mubr.msk.bf16.vlgmr.msra.gmra.mrb[8].mxu1 %vm119_vm1, %v360_v30 }
 0x2af   : > { %736 = vmatpush3.bf16.xpose.msra.mxu1 %v491_v31  ;;  %737 = vmatprep.mubr.msk.bf16.mxu1 %vm800_vm0, %v799_v0 }
 0x2b6   : > { %738 = vmatmul.mubr.msk.bf16.vlgmr.msra.gmra.mrb[12].mxu1 %vm119_vm1, %v484_v32 }
 0x371   : > { %v222_v33 = vpop.f32.mrb[0].mxu1 }
 0x372   : > { %v228_v34 = vpack.c.bf16 %v222_v33, %v222_v33  ;;  %v709_v35 = vpop.f32.mrb[1].mxu1 }
 0x373   : > { %v225_v36 = vpop.f32.mrb[2].mxu1 }
 0x374   : > { %230 = vst.msk [vmem:[%s894_s22] sm:$0xf] %vm229_vm3, %v228_v34  ;;  %v710_v37 = vpop.f32.mrb[3].mxu1 }
 0x379   : > { %v279_v38 = vpop.f32.mrb[4].mxu1 }
 0x37a   : > { %v715_v39 = vpop.f32.mrb[5].mxu1  ;;  %v285_v40 = vsel %vm119_vm1, %v279_v38, -inf }
 0x37b   : > { %286 = vmax.xlane.f32.xlu1 %v285_v40  ;;  %v282_v41 = vpop.f32.mrb[6].mxu1 }
 0x37c   : > { %v716_v42 = vpop.f32.mrb[7].mxu1 }
 0x381   : > { %v403_v43 = vpop.f32.mrb[8].mxu1 }
 0x382   : > { %v409_v44 = vsel %vm119_vm1, %v403_v43, -inf  ;;  %v727_v45 = vpop.f32.mrb[9].mxu1 }
 0x383   : > { %410 = vmax.xlane.f32.xlu0 %v409_v44  ;;  %v406_v46 = vpop.f32.mrb[10].mxu1 }
 0x384   : > { %v728_v47 = vpop.f32.mrb[11].mxu1 }
 0x389   : > { %v527_v48 = vpop.f32.mrb[12].mxu1 }
 0x38a   : > { %v533_v49 = vsel %vm119_vm1, %v527_v48, -inf  ;;  %v739_v50 = vpop.f32.mrb[13].mxu1 }
 0x38b   : > { %534 = vmax.xlane.f32.xlu1 %v533_v49  ;;  %v530_v51 = vpop.f32.mrb[14].mxu1 }
 0x38c   : > { %v740_v52 = vpop.f32.mrb[15].mxu1 }
 0x408   : > { %v287_v53 = vpop.xlane.xlu1 %286 }
 0x409   : > { %v288_v54 = vsub.f32 %v279_v38, %v287_v53 }
 0x40b   : > { %v289_v55 = vmul.f32 1.442695, %v288_v54 }
 0x40d   : > { %779 = vpow2.f32 %v289_v55 }
 0x410   : > { %v411_v63 = vpop.xlane.xlu0 %410 }
 0x411   : > { %v412_v1 = vsub.f32 %v403_v43, %v411_v63 }
 0x413   : > { %v413_v2 = vmul.f32 1.442695, %v412_v1 }
 0x417   : > { %v780_v56 = vpop.eup %779 }
 0x418   : > { %v535_v57 = vpop.xlane.xlu1 %534  ;;  %v291_v58 = vsel %vm119_vm1, %v780_v56, 0.0 }
 0x419   : > { %v536_v59 = vsub.f32 %v527_v48, %v535_v57  ;;  %292 = vadd.xlane.f32.xlu1 %v291_v58 }
 0x41b   : > { %v537_v60 = vmul.f32 1.442695, %v536_v59 }
 0x41d   : > { %781 = vpow2.f32 %v537_v60 }
 0x41e   : > { %783 = vpow2.f32 %v413_v2 }
 0x427   : > { %v782_v61 = vpop.eup %781 }
 0x428   : > { %v539_v62 = vsel %vm119_vm1, %v782_v61, 0.0  ;;  %v784_v3 = vpop.eup %783 }
 0x429   : > { %540 = vadd.xlane.f32.xlu0 %v539_v62  ;;  %v415_v4 = vsel %vm119_vm1, %v784_v3, 0.0 }
 0x42a   : > { %298 = vrot.lane.b32.xlu1 %v856_v5, %s809_s23 }
 0x43f   : > { %422 = vrot.lane.b32.xlu0 %v869_v19, %s810_s24 }
 0x44e   : > { %416 = vadd.xlane.f32.xlu1 %v415_v4 }
 0x45f   : > { %546 = vrot.lane.b32.xlu1 %v861_v11, %s811_s25 }
 0x4a6   : > { %v293_v6 = vpop.xlane.xlu1 %292 }
 0x4a7   : > { %785 = vrcp.f32 %v293_v6 }
 0x4aa   : > { %v299_v7 = vpop.permute.xlu1 %298 }
 0x4ab   : > { %v304_v8 = vsel %vm184_vm2, %v299_v7, 0 }
 0x4ac   : > { %718 = vmatpush3.bf16.msra.mxu0 %v304_v8 }
 0x4ad   : > { %729 = vmatprep.subr.bf16.mxu0 %v799_v0 }
 0x4b1   : > { %v786_v5 = vpop.eup %785 }
 0x4b2   : > { %v296_v9 = vmul.f32 %v786_v5, %v780_v56 }
 0x4b4   : > { %v297_v10 = vpack.c.bf16 %v296_v9, %v296_v9 }
 0x4b6   : > { %720 = vmatmul.mubr.msk.bf16.vlgmr.msra.gmra.mrb[4].mxu0 %vm119_vm1, %v297_v10  ;;  %v541_v12 = vpop.xlane.xlu0 %540 }
 0x4b7   : > { %731 = vmatprep.mubr.msk.bf16.mxu0 %vm800_vm0, %v799_v0 }
 0x4ba   : > { %v423_v13 = vpop.permute.xlu0 %422 }
 0x4bb   : > { %v428_v11 = vsel %vm184_vm2, %v423_v13, 0 }
 0x4bc   : > { %730 = vmatpush3.bf16.msra.mxu0 %v428_v11 }
 0x4bd   : > { %741 = vmatprep.subr.bf16.mxu0 %v799_v0 }
 0x4db   : > { %v417_v14 = vpop.xlane.xlu1 %416 }
 0x4dc   : > { %787 = vrcp.f32 %v417_v14 }
 0x4dd   : > { %789 = vrcp.f32 %v541_v12 }
 0x4df   : > { %v547_v16 = vpop.permute.xlu1 %546 }
 0x4e0   : > { %v552_v18 = vsel %vm184_vm2, %v547_v16, 0 }
 0x4e6   : > { %v788_v15 = vpop.eup %787 }
 0x4e7   : > { %v420_v17 = vmul.f32 %v788_v15, %v784_v3  ;;  %v790_v20 = vpop.eup %789 }
 0x4e8   : > { %v544_v21 = vmul.f32 %v790_v20, %v782_v61 }
 0x4e9   : > { %v421_v19 = vpack.c.bf16 %v420_v17, %v420_v17 }
 0x4ea   : > { %v545_v22 = vpack.c.bf16 %v544_v21, %v544_v21 }
 0x4eb   : > { %732 = vmatmul.mubr.msk.bf16.vlgmr.msra.gmra.mrb[8].mxu0 %vm119_vm1, %v421_v19 }
 0x4ec   : > { %742 = vmatpush3.bf16.msra.mxu0 %v552_v18  ;;  %743 = vmatprep.mubr.msk.bf16.mxu0 %vm800_vm0, %v799_v0 }
 0x4f3   : > { %744 = vmatmul.mubr.msk.bf16.vlgmr.msra.gmra.mrb[12].mxu0 %vm119_vm1, %v545_v22 }
 0x589   : > { %v340_v23 = vpop.f32.mrb[4].mxu0 }
 0x58a   : > { %v680_v24 = vpack.c.bf16 %v340_v23, %v340_v23  ;;  %v721_v25 = vpop.f32.mrb[5].mxu0 }
 0x58b   : > { %v343_v26 = vpop.f32.mrb[6].mxu0 }
 0x58c   : > { %350 = vrot.lane.b32.xlu1 %v680_v24, %s812_s26  ;;  %v722_v27 = vpop.f32.mrb[7].mxu0 }
 0x5be   : > { %v464_v28 = vpop.f32.mrb[8].mxu0 }
 0x5bf   : > { %v681_v29 = vpack.c.bf16 %v464_v28, %v464_v28  ;;  %v733_v30 = vpop.f32.mrb[9].mxu0 }
 0x5c0   : > { %v467_v31 = vpop.f32.mrb[10].mxu0 }
 0x5c1   : > { %474 = vrot.lane.b32.xlu0 %v681_v29, %s813_s27  ;;  %v734_v0 = vpop.f32.mrb[11].mxu0 }
 0x5c6   : > { %v588_v32 = vpop.f32.mrb[12].mxu0 }
 0x5c7   : > { %v682_v33 = vpack.c.bf16 %v588_v32, %v588_v32  ;;  %v745_v34 = vpop.f32.mrb[13].mxu0 }
 0x5c8   : > { %v591_v35 = vpop.f32.mrb[14].mxu0 }
 0x5c9   : > { %598 = vrot.lane.b32.xlu1 %v682_v33, %s814_s28  ;;  %v746_v36 = vpop.f32.mrb[15].mxu0 }
 0x5fe   : > { %v351_v37 = vpop.permute.xlu1 %350 }
 0x5ff   : > { %354 = vst.msk [vmem:[%s894_s22] sm:$0xf] %vm353_vm4, %v351_v37 }
 0x633   : > { %v475_v38 = vpop.permute.xlu0 %474 }
 0x634   : > { %478 = vst.msk [vmem:[%s894_s22] sm:$0xf] %vm477_vm5, %v475_v38 }
 0x63b   : > { %v599_v39 = vpop.permute.xlu1 %598 }
 0x63c   : > { %602 = vst.msk [vmem:[%s894_s22] sm:$0xf] %vm601_vm6, %v599_v39 }
 0x63d PF: > { %s11_s6 = sadd.s32 1, %s797_s6  }
 0x63e   : > { %p8_p4 = scmp.ge.s32.totalorder %s11_s6, 4  }
 0x640   :  { %10 = sbr.rel (!%p8_p4) target bundleno = 1 (0x1), region = 54 }

// kernel: transformer_forward.13
= control target key start
LH: loop header
LB: loop body
LE: loop exit
PB: predicated region body
PF: predicated region fallthrough
CT: control target
= control target key end

     0   :  { %vm29_vm0 = vcmask 261120   ;;  %v266_v15 = vmov 0.0   ;;  %vm267_vm1 = vmmov 0   ;;  %s327_s0 = inlined_call_operand.vmem [shape: f32[16,32], index: 0, kind: input, shape index: {}]   ;;  %s328_s3 = inlined_call_operand.vmem [shape: bf16[32,128], index: 3, kind: input, shape index: {}]   ;;  %s329_s1 = inlined_call_operand.vmem [shape: f32[1,32], index: 1, kind: input, shape index: {}]   ;;  %s330_s2 = inlined_call_operand.vmem [shape: f32[1,32], index: 2, kind: input, shape index: {}]   ;;  %s331_s4 = inlined_call_operand.vmem [shape: f32[1,128], index: 4, kind: input, shape index: {}]   ;;  %s332_s5 = inlined_call_operand.vmem [shape: bf16[16,128], index: 5, kind: output, shape index: {}]  }
   0x1   :  { %v27_v0 = vld [vmem:[%s327_s0] sm:$0xff]  ;;  %v28_v1 = vld [vmem:[%s327_s0 + $0x8] sm:$0xff]  ;;  %242 = vmatprep.subr.bf16.mxu0 %v266_v15  ;;  %246 = vmatprep.mubr.msk.bf16.mxu0 %vm267_vm1, %v266_v15 }
   0x2   :  { %v30_v2 = vsel %vm29_vm0, %v27_v0, 0.0  ;;  %v33_v3 = vsel %vm29_vm0, %v28_v1, 0.0  ;;  %v252_v14 = vld [vmem:[%s328_s3] sm:$0xff]   ;;  %v253_v16 = vld [vmem:[%s328_s3 + $0x8] sm:$0xff]  }
   0x3   :  { %31 = vadd.xlane.f32.xlu0 %v30_v2  ;;  %243 = vmatpush3.bf16.msra.mxu0 %v252_v14  ;;  %v224_v25 = vld [vmem:[%s329_s1] ss:$0 sm:$0xff] }
   0x4   :  { %244 = vmatprep.subr.bf16.mxu0 %v266_v15  ;;  %v225_v29 = vld [vmem:[%s330_s2] ss:$0 sm:$0xff] }
   0x5   :  { %v229_v34 = vld [vmem:[%s331_s4] ss:$0 sm:$0xff] }
   0x7   :  { %34 = vadd.xlane.f32.xlu0 %v33_v3  ;;  %245 = vmatpush3.bf16.msra.mxu0 %v253_v16 }
  0x90   :  { %v32_v4 = vpop.xlane.xlu0 %31 }
  0x91   :  { %v37_v5 = vmul.f32 0.03125, %v32_v4 }
  0x93   :  { %v39_v6 = vsub.f32 %v27_v0, %v37_v5 }
  0x94   :  { %v35_v7 = vpop.xlane.xlu0 %34 }
  0x95   :  { %v38_v8 = vmul.f32 0.03125, %v35_v7  ;;  %v41_v9 = vmul.f32 %v39_v6, %v39_v6 }
  0x97   :  { %v40_v10 = vsub.f32 %v28_v1, %v38_v8  ;;  %v43_v11 = vsel %vm29_vm0, %v41_v9, 0.0 }
  0x98   :  { %44 = vadd.xlane.f32.xlu1 %v43_v11 }
  0x99   :  { %v42_v12 = vmul.f32 %v40_v10, %v40_v10 }
  0x9b   :  { %v46_v13 = vsel %vm29_vm0, %v42_v12, 0.0 }
  0x9c   :  { %47 = vadd.xlane.f32.xlu1 %v46_v13 }
 0x125   :  { %v45_v17 = vpop.xlane.xlu1 %44 }
 0x126   :  { %v49_v18 = vmul.f32 0.03125, %v45_v17 }
 0x128   :  { %v51_v19 = vadd.f32 1.1920929e-07, %v49_v18 }
 0x129   :  { %v48_v20 = vpop.xlane.xlu1 %47 }
 0x12a   :  { %254 = vrsqrt.f32 %v51_v19  ;;  %v50_v21 = vmul.f32 0.03125, %v48_v20 }
 0x12c   :  { %v52_v22 = vadd.f32 1.1920929e-07, %v50_v21 }
 0x12e   :  { %256 = vrsqrt.f32 %v52_v22 }
 0x134   :  { %v255_v23 = vpop.eup %254 }
 0x135   :  { %v55_v24 = vmul.f32 %v255_v23, %v39_v6 }
 0x137   :  { %v64_v28 = vmul.f32 %v224_v25, %v55_v24 }
 0x138   :  { %v257_v26 = vpop.eup %256 }
 0x139   :  { %v56_v27 = vmul.f32 %v257_v26, %v40_v10  ;;  %v73_v31 = vadd.f32 %v225_v29, %v64_v28 }
 0x13b   :  { %v65_v30 = vmul.f32 %v224_v25, %v56_v27 }
 0x13d   :  { %v74_v32 = vadd.f32 %v225_v29, %v65_v30 }
 0x13f   :  { %v75_v33 = vpack.c.bf16 %v74_v32, %v73_v31 }
 0x141   :  { %247 = vmatmul.mubr.msk.bf16.vlgmr.msra.gmra.mrb[0].mxu0 %vm29_vm0, %v75_v33 }
 0x214   :  { %v131_v35 = vpop.f32.mrb[0].mxu0 }
 0x215   :  { %v154_v36 = vadd.f32 %v229_v34, %v131_v35  ;;  %v248_v37 = vpop.f32.mrb[1].mxu0 }
 0x216   :  { %v134_v38 = vpop.f32.mrb[2].mxu0 }
 0x217   :  { %v158_v39 = vmul.f32 0.70710677, %v154_v36  ;;  %v155_v40 = vadd.f32 %v229_v34, %v134_v38  ;;  %v249_v41 = vpop.f32.mrb[3].mxu0  ;;  %v156_v22 = vmul.f32 0.5, %v154_v36 }
 0x219   :  { %v160_v42 = vand.u32 2147483647, %v158_v39  ;;  %v159_v43 = vmul.f32 0.70710677, %v155_v40  ;;  %vm200_vm2 = vcmp.ge.f32.partialorder %v158_v39, 0.0  ;;  %v157_v23 = vmul.f32 0.5, %v155_v40 }
 0x21b   :  { %v162_v44 = vmul.f32 0.3275911, %v160_v42  ;;  %v161_v45 = vand.u32 2147483647, %v159_v43  ;;  %v188_v49 = vsub.f32 0.0, %v160_v42  ;;  %vm201_vm3 = vcmp.ge.f32.partialorder %v159_v43, 0.0 }
 0x21d   :  { %v164_v46 = vadd.f32 1.0, %v162_v44  ;;  %v163_v47 = vmul.f32 0.3275911, %v161_v45  ;;  %v189_v50 = vsub.f32 0.0, %v161_v45  ;;  %v190_v52 = vmul.f32 %v188_v49, %v160_v42 }
 0x21f   :  { %258 = vrcp.f32 %v164_v46  ;;  %v165_v48 = vadd.f32 1.0, %v163_v47  ;;  %v191_v56 = vmul.f32 %v189_v50, %v161_v45  ;;  %v192_v57 = vmul.f32 1.442695, %v190_v52 }
 0x221   :  { %260 = vrcp.f32 %v165_v48  ;;  %v194_v62 = vmul.f32 1.442695, %v191_v56 }
 0x222   :  { %262 = vpow2.f32 %v192_v57 }
 0x223   :  { %264 = vpow2.f32 %v194_v62 }
 0x229   :  { %v259_v51 = vpop.eup %258 }
 0x22a   :  { %v170_v53 = vmul.f32 1.0614054, %v259_v51 }
 0x22b   :  { %v261_v54 = vpop.eup %260 }
 0x22c   :  { %v172_v55 = vadd.f32 -1.4531521, %v170_v53  ;;  %v171_v58 = vmul.f32 1.0614054, %v261_v54  ;;  %v263_v9 = vpop.eup %262 }
 0x22d   :  { %v265_v13 = vpop.eup %264 }
 0x22e   :  { %v174_v59 = vmul.f32 %v259_v51, %v172_v55  ;;  %v173_v60 = vadd.f32 -1.4531521, %v171_v58 }
 0x230   :  { %v176_v61 = vadd.f32 1.4214138, %v174_v59  ;;  %v175_v63 = vmul.f32 %v261_v54, %v173_v60 }
 0x232   :  { %v178_v0 = vmul.f32 %v259_v51, %v176_v61  ;;  %v177_v1 = vadd.f32 1.4214138, %v175_v63 }
 0x234   :  { %v180_v2 = vadd.f32 -0.28449672, %v178_v0  ;;  %v179_v3 = vmul.f32 %v261_v54, %v177_v1 }
 0x236   :  { %v182_v4 = vmul.f32 %v259_v51, %v180_v2  ;;  %v181_v5 = vadd.f32 -0.28449672, %v179_v3 }
 0x238   :  { %v184_v6 = vadd.f32 0.2548296, %v182_v4  ;;  %v183_v7 = vmul.f32 %v261_v54, %v181_v5 }
 0x23a   :  { %v186_v8 = vmul.f32 %v259_v51, %v184_v6  ;;  %v185_v10 = vadd.f32 0.2548296, %v183_v7 }
 0x23c   :  { %v196_v11 = vmul.f32 %v263_v9, %v186_v8  ;;  %v187_v12 = vmul.f32 %v261_v54, %v185_v10 }
 0x23e   :  { %v198_v14 = vsub.f32 1.0, %v196_v11  ;;  %v197_v15 = vmul.f32 %v265_v13, %v187_v12 }
 0x240   :  { %v202_v16 = vsub.f32 0.0, %v198_v14  ;;  %v199_v17 = vsub.f32 1.0, %v197_v15 }
 0x242   :  { %v204_v18 = vsel %vm200_vm2, %v198_v14, %v202_v16  ;;  %v203_v19 = vsub.f32 0.0, %v199_v17 }
 0x243   :  { %v206_v20 = vadd.f32 1.0, %v204_v18 }
 0x244   :  { %v205_v21 = vsel %vm201_vm3, %v199_v17, %v203_v19 }
 0x245   :  { %v207_v24 = vadd.f32 1.0, %v205_v21  ;;  %v208_v25 = vmul.f32 %v206_v20, %v156_v22 }
 0x247   :  { %v209_v26 = vmul.f32 %v207_v24, %v157_v23 }
 0x249   :  { %v237_v27 = vpack.c.bf16 %v209_v26, %v208_v25 }
 0x24b   :  { %238 = vst [vmem:[%s332_s5] sm:$0xff] %v237_v27  }

// kernel: transformer_forward.14
= control target key start
LH: loop header
LB: loop body
LE: loop exit
PB: predicated region body
PF: predicated region fallthrough
CT: control target
= control target key end

     0   :  { %vm22_vm0 = vcmask 261120   ;;  %v219_v0 = vmov 0.0   ;;  %vm220_vm1 = vmmov 0   ;;  %s294_s1 = inlined_call_operand.vmem [shape: bf16[128,32], index: 1, kind: input, shape index: {}]   ;;  %s295_s0 = inlined_call_operand.vmem [shape: bf16[16,128], index: 0, kind: input, shape index: {}]   ;;  %s296_s2 = inlined_call_operand.vmem [shape: f32[1,32], index: 2, kind: input, shape index: {}]   ;;  %s297_s3 = inlined_call_operand.vmem [shape: f32[16,32], index: 3, kind: input, shape index: {}]   ;;  %s298_s4 = inlined_call_operand.vmem [shape: f32[16,32], index: 4, kind: output, shape index: {}]  }
   0x1   :  { %188 = vmatprep.subr.bf16.mxu0 %v219_v0  ;;  %v210_v1 = vld [vmem:[%s294_s1] sm:$0xff]   ;;  %204 = vmatprep.mubr.msk.bf16.mxu0 %vm220_vm1, %v219_v0  ;;  %23 = vst.msk [vmem:[#allocation2] sm:$0xff] %vm22_vm0, %v219_v0  ;;  %24 = vst.msk [vmem:[#allocation2 + $0x8] sm:$0xff] %vm22_vm0, %v219_v0  ;;  %v211_v2 = vld [vmem:[%s294_s1 + $0x8] sm:$0xff]  }
   0x2   :  { %189 = vmatpush3.bf16.msra.mxu0 %v210_v1  ;;  %v212_v3 = vld [vmem:[%s294_s1 + $0x10] sm:$0xff]   ;;  %v213_v4 = vld [vmem:[%s294_s1 + $0x18] sm:$0xff]   ;;  %v214_v5 = vld [vmem:[%s294_s1 + $0x20] sm:$0xff]  }
   0x3   :  { %190 = vmatprep.subr.bf16.mxu0 %v219_v0  ;;  %v215_v6 = vld [vmem:[%s294_s1 + $0x28] sm:$0xff]   ;;  %v216_v7 = vld [vmem:[%s294_s1 + $0x30] sm:$0xff]   ;;  %v217_v8 = vld [vmem:[%s294_s1 + $0x38] sm:$0xff]  }
   0x4   :  { %v218_v9 = vld [vmem:[%s295_s0] sm:$0xff]   ;;  %v160_v22 = vld [vmem:[%s297_s3 + $0x8] sm:$0xff] }
   0x5   :  { %v178_v18 = vld [vmem:[%s296_s2] ss:$0 sm:$0xff] }
   0x6   :  { %191 = vmatpush3.bf16.msra.mxu0 %v211_v2  ;;  %v159_v20 = vld [vmem:[%s297_s3] sm:$0xff] }
   0x7   :  { %192 = vmatprep.subr.bf16.mxu0 %v219_v0 }
   0x8   :  { %v27_v10 = vld [vmem:[#allocation2] sm:$0xff]  ;;  %v28_v12 = vld [vmem:[#allocation2 + $0x8] sm:$0xff] }
   0xa   :  { %193 = vmatpush3.bf16.msra.mxu0 %v212_v3 }
   0xb   :  { %194 = vmatprep.subr.bf16.mxu0 %v219_v0 }
   0xe   :  { %195 = vmatpush3.bf16.msra.mxu0 %v213_v4 }
   0xf   :  { %196 = vmatprep.subr.bf16.mxu0 %v219_v0 }
  0x12   :  { %197 = vmatpush3.bf16.msra.mxu0 %v214_v5 }
  0x13   :  { %198 = vmatprep.subr.bf16.mxu0 %v219_v0 }
  0x16   :  { %199 = vmatpush3.bf16.msra.mxu0 %v215_v6 }
  0x17   :  { %200 = vmatprep.subr.bf16.mxu0 %v219_v0 }
  0x1a   :  { %201 = vmatpush3.bf16.msra.mxu0 %v216_v7 }
  0x1b   :  { %202 = vmatprep.subr.bf16.mxu0 %v219_v0 }
  0x1e   :  { %203 = vmatpush3.bf16.msra.mxu0 %v217_v8 }
  0x21   :  { %205 = vmatmul.mubr.bf16.vlgmr.msra.gmra.mrb[0].mxu0 %v218_v9 }
  0xf4   :  { %v133_v11 = vpop.f32.mrb[0].mxu0 }
  0xf5   :  { %v140_v13 = vadd.f32 %v133_v11, %v27_v10  ;;  %v206_v14 = vpop.f32.mrb[1].mxu0 }
  0xf6   :  { %v136_v15 = vpop.f32.mrb[2].mxu0 }
  0xf7   :  { %143 = vst.msk [vmem:[#allocation2] sm:$0xff] %vm22_vm0, %v140_v13  ;;  %v141_v16 = vadd.f32 %v136_v15, %v28_v12  ;;  %v207_v17 = vpop.f32.mrb[3].mxu0 }
  0xf9   :  { %144 = vst.msk [vmem:[#allocation2 + $0x8] sm:$0xff] %vm22_vm0, %v141_v16 }
  0xfe   :  { %v148_v19 = vld [vmem:[#allocation2] sm:$0xff] }
  0xff   :  { %v157_v21 = vadd.f32 %v178_v18, %v148_v19 }
 0x100   :  { %v149_v23 = vld [vmem:[#allocation2 + $0x8] sm:$0xff] }
 0x101   :  { %v161_v24 = vadd.f32 %v159_v20, %v157_v21  ;;  %v158_v25 = vadd.f32 %v178_v18, %v149_v23 }
 0x103   :  { %163 = vst.msk [vmem:[%s298_s4] sm:$0xff] %vm22_vm0, %v161_v24  ;;  %v162_v26 = vadd.f32 %v160_v22, %v158_v25 }
 0x105   :  { %164 = vst.msk [vmem:[%s298_s4 + $0x8] sm:$0xff] %vm22_vm0, %v162_v26 }

</bundles_post_ra>
